<compile_context>
chip_gen: v7x
topology: tpu7x:2x2x1
jax: 0.10.0
libtpu: 0.0.40
codegen_flags: <defaults>
</compile_context>

<pallas_src>
import math
from functools import partial

import jax
import jax.numpy as jnp
from jax import lax
from jax.experimental import pallas as pl
from jax.experimental.pallas import tpu as pltpu

LN_EPS = 1e-5  # PyTorch nn.LayerNorm default


# ---------------------------------------------------------------------------
# In-kernel helpers
# ---------------------------------------------------------------------------
def _layernorm(x, gamma, beta):
    """x: (R, D) fp32, gamma/beta: (1, D) fp32."""
    mean = jnp.mean(x, axis=-1, keepdims=True)
    c = x - mean
    var = jnp.mean(c * c, axis=-1, keepdims=True)
    return c * lax.rsqrt(var + LN_EPS) * gamma + beta


def _attention_core(q, k, v, *, bt, seq, heads, dim_head, compute_dtype,
                    out_dtype):
    """Per-sample / per-head softmax-attention core.

    q, k, v : (bt*seq, heads*dim_head) fp32 (q already pre-scaled).
    returns : (bt*seq, heads*dim_head) in `out_dtype`, heads concatenated in
              the same column order as the fused QKV projection.
    """
    qc = q.astype(compute_dtype)
    kc = k.astype(compute_dtype)
    vc = v.astype(compute_dtype)
    sample_outs = []
    for b in range(bt):                      # static unroll (bt is small)
        r0, r1 = b * seq, (b + 1) * seq
        head_outs = []
        for h in range(heads):               # static unroll
            c0, c1 = h * dim_head, (h + 1) * dim_head
            qh = qc[r0:r1, c0:c1]
            kh = kc[r0:r1, c0:c1]
            vh = vc[r0:r1, c0:c1]
            # dots = q @ k^T (contract dim_head), fp32 accumulation
            dots = lax.dot_general(qh, kh, (((1,), (1,)), ((), ())),
                                   preferred_element_type=jnp.float32)
            m = jnp.max(dots, axis=-1, keepdims=True)
            e = jnp.exp(dots - m)
            inv = pl.reciprocal(jnp.sum(e, axis=-1, keepdims=True), approx=True)
            attn = (e * inv).astype(compute_dtype)
            oh = jnp.dot(attn, vh, preferred_element_type=jnp.float32)
            head_outs.append(oh.astype(out_dtype))          # (seq, dim_head)
        sample_outs.append(jnp.concatenate(head_outs, axis=-1))
    return sample_outs[0] if bt == 1 else jnp.concatenate(sample_outs, axis=0)


# ---------------------------------------------------------------------------
# Kernels
# ---------------------------------------------------------------------------
def _self_attn_kernel(x_ref, g_ref, b_ref, wqkv_ref, wout_ref, bout_ref, o_ref,
                      *, heads, dim_head, scale, compute_dtype, project_out):
    """One batch tile: x + to_out(MHA(LayerNorm(x))).

    x_ref   : (Bt, N, D)
    g/b_ref : (1, D) fp32
    wqkv_ref: (D, 3*heads*dh) compute_dtype  (columns [q | k | v], head-ordered)
    wout_ref: (heads*dh, D)   compute_dtype
    bout_ref: (1, D) fp32
    o_ref   : (Bt, N, D)
    """
    bt, n, d = x_ref.shape
    inner = heads * dim_head
    x = x_ref[...].astype(jnp.float32).reshape(bt * n, d)
    xn = _layernorm(x, g_ref[...], b_ref[...]).astype(compute_dtype)

    # one lane-dense fused QKV projection: (Bt*N, D) @ (D, 3*inner)
    qkv = jnp.dot(xn, wqkv_ref[...], preferred_element_type=jnp.float32)
    q = qkv[:, :inner] * scale
    k = qkv[:, inner:2 * inner]
    v = qkv[:, 2 * inner:]

    core_dtype = compute_dtype if project_out else jnp.float32
    o = _attention_core(q, k, v, bt=bt, seq=n, heads=heads, dim_head=dim_head,
                        compute_dtype=compute_dtype, out_dtype=core_dtype)
    if project_out:
        y = jnp.dot(o, wout_ref[...],
                    preferred_element_type=jnp.float32) + bout_ref[...]
    else:
        y = o  # heads == 1 and dim_head == D -> nn.Identity
    o_ref[...] = (x + y).reshape(bt, n, d).astype(o_ref.dtype)


def _cross_attn_kernel(x1_ref, x2_ref, g1_ref, b1_ref, g2_ref, b2_ref,
                       wq_ref, wkv_ref, wout_ref, bout_ref, o_ref,
                       *, heads, dim_head, scale, compute_dtype, project_out):
    """One (direction, batch-tile) grid point of CrossAttention + residual.

    direction d = pl.program_id(0):
      d == 0: queries from stream 1, keys/values from stream 2, to_out1
      d == 1: queries from stream 2, keys/values from stream 1, to_out2
    wq_ref  : (1, D, inner)      (q-part of the q-stream's to_qkv, per direction)
    wkv_ref : (1, D, 2*inner)    (kv-part of the kv-stream's to_qkv, per direction)
    wout_ref: (1, inner, D), bout_ref: (1, 1, D)
    o_ref   : (1, Bt, N, D)
    """
    d = pl.program_id(0)
    bt, n, dm = x1_ref.shape
    inner = heads * dim_head

    x1 = x1_ref[...].astype(jnp.float32).reshape(bt * n, dm)
    x2 = x2_ref[...].astype(jnp.float32).reshape(bt * n, dm)
    x1n = _layernorm(x1, g1_ref[...], b1_ref[...])     # norm1 always on x1
    x2n = _layernorm(x2, g2_ref[...], b2_ref[...])     # norm2 always on x2

    is_first = d == 0
    xq = jnp.where(is_first, x1, x2)                   # residual base (pre-norm)
    qsrc = jnp.where(is_first, x1n, x2n).astype(compute_dtype)
    kvsrc = jnp.where(is_first, x2n, x1n).astype(compute_dtype)

    q = jnp.dot(qsrc, wq_ref[0], preferred_element_type=jnp.float32) * scale
    kv = jnp.dot(kvsrc, wkv_ref[0], preferred_element_type=jnp.float32)

    core_dtype = compute_dtype if project_out else jnp.float32
    o = _attention_core(q, kv[:, :inner], kv[:, inner:], bt=bt, seq=n,
                        heads=heads, dim_head=dim_head,
                        compute_dtype=compute_dtype, out_dtype=core_dtype)
    if project_out:
        y = jnp.dot(o, wout_ref[0],
                    preferred_element_type=jnp.float32) + bout_ref[0]
    else:
        y = o
    o_ref[0] = (xq + y).reshape(bt, n, dm).astype(o_ref.dtype)


# ---------------------------------------------------------------------------
# Parameter packing (done ONCE, outside the jitted hot path)
# ---------------------------------------------------------------------------
def prepare_attention_params(params, *, heads, dim_head,
                             compute_dtype=jnp.bfloat16):
    """(gamma, beta, wqkv(D,3I), wout(I,D), bout(D,)) -> kernel layout."""
    gamma, beta, wqkv, wout, bout = params
    d = gamma.shape[-1]
    return {
        "gamma": gamma.reshape(1, d).astype(jnp.float32),
        "beta": beta.reshape(1, d).astype(jnp.float32),
        "wqkv": wqkv.astype(compute_dtype),           # (D, 3*inner), cols [q|k|v]
        "wout": wout.astype(compute_dtype),           # (inner, D)
        "bout": bout.reshape(1, d).astype(jnp.float32),
    }


def prepare_cross_attention_params(cp1, cp2, *, heads, dim_head,
                                   compute_dtype=jnp.bfloat16):
    g1, b1, w1, o1, bo1 = cp1
    g2, b2, w2, o2, bo2 = cp2
    d = g1.shape[-1]
    inner = heads * dim_head
    return {
        "gamma1": g1.reshape(1, d).astype(jnp.float32),
        "beta1": b1.reshape(1, d).astype(jnp.float32),
        "gamma2": g2.reshape(1, d).astype(jnp.float32),
        "beta2": b2.reshape(1, d).astype(jnp.float32),
        # direction 0: q from stream1, kv from stream2; direction 1: swapped
        "wq": jnp.stack([w1[:, :inner], w2[:, :inner]]).astype(compute_dtype),
        "wkv": jnp.stack([w2[:, inner:], w1[:, inner:]]).astype(compute_dtype),
        "wout": jnp.stack([o1, o2]).astype(compute_dtype),
        "bout": jnp.stack([bo1.reshape(1, d),
                           bo2.reshape(1, d)]).astype(jnp.float32),
    }


def prepare_multi_stream_params(p1, p2, cross_params=None, *, heads, dim_head,
                                compute_dtype=jnp.bfloat16):
    packed = {
        "stream1": prepare_attention_params(p1, heads=heads, dim_head=dim_head,
                                            compute_dtype=compute_dtype),
        "stream2": prepare_attention_params(p2, heads=heads, dim_head=dim_head,
                                            compute_dtype=compute_dtype),
        "cross": None,
    }
    if cross_params is not None:
        packed["cross"] = prepare_cross_attention_params(
            cross_params[0], cross_params[1], heads=heads, dim_head=dim_head,
            compute_dtype=compute_dtype)
    return packed


# ---------------------------------------------------------------------------
# pallas_call wrappers
# ---------------------------------------------------------------------------
def _vmem_limit_bytes():
    """Per-generation VMEM request: ~75% of physical (96 MiB v5e/v6e, 48 MiB v7x)."""
    try:
        info = pltpu.get_tpu_info()
        cap = getattr(info, "vmem_capacity_bytes", None)
        if not cap:
            return None
        return min(int(cap) * 3 // 4, 100 * 1024 * 1024)
    except Exception:
        return None


def _compiler_params(dim_semantics):
    kwargs = {"dimension_semantics": dim_semantics}
    lim = _vmem_limit_bytes()
    if lim is not None:
        kwargs["vmem_limit_bytes"] = lim
    return pltpu.CompilerParams(**kwargs)


def _pick_batch_tile(batch, seq, target_rows=256):
    """Largest divisor of `batch` keeping ~`target_rows` tokens per grid step."""
    cap = max(1, min(batch, target_rows // max(seq, 1)))
    for bt in range(cap, 0, -1):
        if batch % bt == 0:
            return bt
    return 1


def _attention_stream(x, p, *, heads, dim_head, compute_dtype):
    """x + to_out(MHA(LayerNorm(x))) for one stream, one pallas_call."""
    B, N, D = x.shape
    inner = heads * dim_head
    project_out = not (heads == 1 and dim_head == D)
    bt = _pick_batch_tile(B, N)
    kernel = partial(_self_attn_kernel, heads=heads, dim_head=dim_head,
                     scale=dim_head ** (-0.5), compute_dtype=compute_dtype,
                     project_out=project_out)
    return pl.pallas_call(
        kernel,
        out_shape=jax.ShapeDtypeStruct((B, N, D), x.dtype),
        grid_spec=pltpu.PrefetchScalarGridSpec(
            num_scalar_prefetch=0,
            grid=(B // bt,),
            in_specs=[
                pl.BlockSpec((bt, N, D), lambda b: (b, 0, 0)),
                pl.BlockSpec((1, D), lambda b: (0, 0)),
                pl.BlockSpec((1, D), lambda b: (0, 0)),
                pl.BlockSpec((D, 3 * inner), lambda b: (0, 0)),
                pl.BlockSpec((inner, D), lambda b: (0, 0)),
                pl.BlockSpec((1, D), lambda b: (0, 0)),
            ],
            out_specs=pl.BlockSpec((bt, N, D), lambda b: (b, 0, 0)),
        ),
        compiler_params=_compiler_params(("parallel",)),
    )(x, p["gamma"], p["beta"], p["wqkv"], p["wout"], p["bout"])


def _cross_attention_residual(x1, x2, p, *, heads, dim_head, compute_dtype):
    """x_i + to_out_i(cross-attention); grid=(direction, batch)."""
    B, N, D = x1.shape
    inner = heads * dim_head
    project_out = not (heads == 1 and dim_head == D)
    bt = _pick_batch_tile(B, N)
    kernel = partial(_cross_attn_kernel, heads=heads, dim_head=dim_head,
                     scale=dim_head ** (-0.5), compute_dtype=compute_dtype,
                     project_out=project_out)

    x_spec = pl.BlockSpec((bt, N, D), lambda d, b: (b, 0, 0))
    vec_spec = pl.BlockSpec((1, D), lambda d, b: (0, 0))

    out = pl.pallas_call(
        kernel,
        out_shape=jax.ShapeDtypeStruct((2, B, N, D), x1.dtype),
        grid_spec=pltpu.PrefetchScalarGridSpec(
            num_scalar_prefetch=0,
            grid=(2, B // bt),          # (direction, batch); weights resident
            in_specs=[
                x_spec, x_spec,
                vec_spec, vec_spec, vec_spec, vec_spec,
                pl.BlockSpec((1, D, inner), lambda d, b: (d, 0, 0)),
                pl.BlockSpec((1, D, 2 * inner), lambda d, b: (d, 0, 0)),
                pl.BlockSpec((1, inner, D), lambda d, b: (d, 0, 0)),
                pl.BlockSpec((1, 1, D), lambda d, b: (d, 0, 0)),
            ],
            out_specs=pl.BlockSpec((1, bt, N, D), lambda d, b: (d, b, 0, 0)),
        ),
        compiler_params=_compiler_params(("parallel", "parallel")),
    )(x1, x2, p["gamma1"], p["beta1"], p["gamma2"], p["beta2"],
      p["wq"], p["wkv"], p["wout"], p["bout"])
    return out[0], out[1]


def multi_stream_attention(x1, x2, packed_params, *, heads=8, dim_head=64,
                           compute_dtype=jnp.bfloat16):
    """Pallas equivalent of MultiStreamAttention.forward(x1, x2)."""
    y1 = _attention_stream(x1, packed_params["stream1"], heads=heads,
                           dim_head=dim_head, compute_dtype=compute_dtype)
    y2 = _attention_stream(x2, packed_params["stream2"], heads=heads,
                           dim_head=dim_head, compute_dtype=compute_dtype)
    if packed_params["cross"] is not None:
        y1, y2 = _cross_attention_residual(y1, y2, packed_params["cross"],
                                           heads=heads, dim_head=dim_head,
                                           compute_dtype=compute_dtype)
    return y1, y2


# ---------------------------------------------------------------------------
# Parameter init (mirrors PyTorch defaults) and pure-JAX reference
# ---------------------------------------------------------------------------
def init_attention_params(key, dim, heads, dim_head, dtype=jnp.float32):
    inner = heads * dim_head
    k1, k2, k3 = jax.random.split(key, 3)
    gamma = jnp.ones((dim,), dtype)
    beta = jnp.zeros((dim,), dtype)
    lim_qkv = 1.0 / math.sqrt(dim)
    wqkv = jax.random.uniform(k1, (dim, 3 * inner), dtype, -lim_qkv, lim_qkv)
    lim_out = 1.0 / math.sqrt(inner)
    wout = jax.random.uniform(k2, (inner, dim), dtype, -lim_out, lim_out)
    bout = jax.random.uniform(k3, (dim,), dtype, -lim_out, lim_out)
    return (gamma, beta, wqkv, wout, bout)


def _ln_ref(x, gamma, beta):
    mean = jnp.mean(x, axis=-1, keepdims=True)
    var = jnp.mean((x - mean) ** 2, axis=-1, keepdims=True)
    return (x - mean) * lax.rsqrt(var + LN_EPS) * gamma + beta


def _sa_ref(q, k, v, scale):
    dots = jnp.einsum('bhnd,bhmd->bhnm', q, k) * scale
    attn = jax.nn.softmax(dots, axis=-1)
    out = jnp.einsum('bhnm,bhmd->bhnd', attn, v)
    B, H, N, dh = out.shape
    return out.transpose(0, 2, 1, 3).reshape(B, N, H * dh)


def _qkv_ref(x, params, heads, dim_head):
    gamma, beta, wqkv, _, _ = params
    B, N, D = x.shape
    xn = _ln_ref(x.astype(jnp.float32), gamma, beta)
    qkv = xn @ wqkv
    q, k, v = jnp.split(qkv, 3, axis=-1)
    to_h = lambda t: t.reshape(B, N, heads, dim_head).transpose(0, 2, 1, 3)
    return to_h(q), to_h(k), to_h(v)


def _project_ref(out, params, heads, dim_head, dim):
    _, _, _, wout, bout = params
    if not (heads == 1 and dim_head == dim):
        out = out @ wout + bout
    return out


def _multi_stream_attention_ref(x1, x2, p1, p2, cross, heads, dim_head):
    D = x1.shape[-1]
    scale = dim_head ** (-0.5)
    q1, k1, v1 = _qkv_ref(x1, p1, heads, dim_head)
    x1 = x1 + _project_ref(_sa_ref(q1, k1, v1, scale), p1, heads, dim_head, D)
    q2, k2, v2 = _qkv_ref(x2, p2, heads, dim_head)
    x2 = x2 + _project_ref(_sa_ref(q2, k2, v2, scale), p2, heads, dim_head, D)
    if cross is not None:
        cp1, cp2 = cross
        cq1, ck1, cv1 = _qkv_ref(x1, cp1, heads, dim_head)
        cq2, ck2, cv2 = _qkv_ref(x2, cp2, heads, dim_head)
        r1 = _project_ref(_sa_ref(cq1, ck2, cv2, scale), cp1, heads, dim_head, D)
        r2 = _project_ref(_sa_ref(cq2, ck1, cv1, scale), cp2, heads, dim_head, D)
        x1 = x1 + r1
        x2 = x2 + r2
    return x1, x2


# ---------------------------------------------------------------------------
if __name__ == "__main__":
    # Small demo shapes: batch=2, seq=8, dim=32, heads=2, dim_head=16.
    B, N, D = 2, 8, 32
    heads, dim_head = 2, 16

    key = jax.random.PRNGKey(0)
    kx1, kx2, kp1, kp2, kc1, kc2 = jax.random.split(key, 6)
    x1 = jax.random.normal(kx1, (B, N, D), jnp.float32)
    x2 = jax.random.normal(kx2, (B, N, D), jnp.float32)
    p1 = init_attention_params(kp1, D, heads, dim_head)
    p2 = init_attention_params(kp2, D, heads, dim_head)
    cross = (init_attention_params(kc1, D, heads, dim_head),
             init_attention_params(kc2, D, heads, dim_head))

    # Weight re-layout / casting happens ONCE, outside the jitted forward.
    packed_plain = prepare_multi_stream_params(p1, p2, None,
                                               heads=heads, dim_head=dim_head)
    packed_cross = prepare_multi_stream_params(p1, p2, cross,
                                               heads=heads, dim_head=dim_head)

    fwd = jax.jit(partial(multi_stream_attention, heads=heads,
                          dim_head=dim_head))

    # cross_attention=False path (module default)
    y1, y2 = fwd(x1, x2, packed_plain)
    jax.block_until_ready((y1, y2))
    r1, r2 = _multi_stream_attention_ref(x1, x2, p1, p2, None, heads, dim_head)
    # bf16 matmuls with fp32 accumulation -> small deviation vs fp32 reference.
    assert jnp.allclose(y1, r1, atol=5e-2, rtol=5e-2), "stream 1 mismatch"
    assert jnp.allclose(y2, r2, atol=5e-2, rtol=5e-2), "stream 2 mismatch"

    # cross_attention=True path
    y1c, y2c = fwd(x1, x2, packed_cross)
    jax.block_until_ready((y1c, y2c))
    r1c, r2c = _multi_stream_attention_ref(x1, x2, p1, p2, cross, heads,
                                           dim_head)
    assert jnp.allclose(y1c, r1c, atol=5e-2, rtol=5e-2), "cross stream 1 mismatch"
    assert jnp.allclose(y2c, r2c, atol=5e-2, rtol=5e-2), "cross stream 2 mismatch"

    print("KERNEL_OK")
</pallas_src>

<mosaic_0001>
module attributes {stable_mosaic.version = 11 : i64} {
  func.func @_self_attn_kernel(%arg0: i32, %arg1: memref<2x8x32xf32, #tpu.memory_space<vmem>>, %arg2: memref<1x32xf32, #tpu.memory_space<vmem>>, %arg3: memref<1x32xf32, #tpu.memory_space<vmem>>, %arg4: memref<32x96xbf16, #tpu.memory_space<vmem>>, %arg5: memref<32x32xbf16, #tpu.memory_space<vmem>>, %arg6: memref<1x32xf32, #tpu.memory_space<vmem>>, %arg7: memref<2x8x32xf32, #tpu.memory_space<vmem>>) attributes {dimension_semantics = [#tpu.dimension_semantics<parallel>], iteration_bounds = array<i64: 1>, scalar_prefetch = 0 : i64, scratch_operands = 0 : i64, tpu.core_type = #tpu.core_type<tc>, window_params = [{transform_indices = @transform_0, window_bounds = array<i64: 2, 8, 32>}, {pipeline_mode = #tpu.pipeline_mode<synchronous>, transform_indices = @transform_1, window_bounds = array<i64: 1, 32>}, {pipeline_mode = #tpu.pipeline_mode<synchronous>, transform_indices = @transform_2, window_bounds = array<i64: 1, 32>}, {pipeline_mode = #tpu.pipeline_mode<synchronous>, transform_indices = @transform_3, window_bounds = array<i64: 32, 96>}, {pipeline_mode = #tpu.pipeline_mode<synchronous>, transform_indices = @transform_4, window_bounds = array<i64: 32, 32>}, {pipeline_mode = #tpu.pipeline_mode<synchronous>, transform_indices = @transform_5, window_bounds = array<i64: 1, 32>}, {transform_indices = @transform_6, window_bounds = array<i64: 2, 8, 32>}]} {
    %c0 = arith.constant 0 : index
    %c0_0 = arith.constant 0 : index
    %c0_1 = arith.constant 0 : index
    %0 = vector.load %arg1[%c0, %c0_0, %c0_1] : memref<2x8x32xf32, #tpu.memory_space<vmem>>, vector<2x8x32xf32>
    %1 = vector.shape_cast %0 : vector<2x8x32xf32> to vector<16x32xf32>
    %c0_2 = arith.constant 0 : index
    %c0_3 = arith.constant 0 : index
    %2 = vector.load %arg2[%c0_2, %c0_3] : memref<1x32xf32, #tpu.memory_space<vmem>>, vector<1x32xf32>
    %c0_4 = arith.constant 0 : index
    %c0_5 = arith.constant 0 : index
    %3 = vector.load %arg3[%c0_4, %c0_5] : memref<1x32xf32, #tpu.memory_space<vmem>>, vector<1x32xf32>
    %cst = arith.constant dense<0.000000e+00> : vector<16xf32>
    %4 = vector.multi_reduction <add>, %1, %cst [1] : vector<16x32xf32> to vector<16xf32>
    %5 = vector.shape_cast %4 : vector<16xf32> to vector<16x1xf32>
    %cst_6 = arith.constant 3.200000e+01 : f32
    %6 = vector.broadcast %cst_6 : f32 to vector<16x1xf32>
    %7 = arith.divf %5, %6 : vector<16x1xf32>
    %8 = vector.broadcast %7 : vector<16x1xf32> to vector<16x32xf32>
    %9 = arith.subf %1, %8 : vector<16x32xf32>
    %10 = arith.mulf %9, %9 : vector<16x32xf32>
    %cst_7 = arith.constant dense<0.000000e+00> : vector<16xf32>
    %11 = vector.multi_reduction <add>, %10, %cst_7 [1] : vector<16x32xf32> to vector<16xf32>
    %12 = vector.shape_cast %11 : vector<16xf32> to vector<16x1xf32>
    %cst_8 = arith.constant 3.200000e+01 : f32
    %13 = vector.broadcast %cst_8 : f32 to vector<16x1xf32>
    %14 = arith.divf %12, %13 : vector<16x1xf32>
    %cst_9 = arith.constant 9.99999974E-6 : f32
    %15 = vector.broadcast %cst_9 : f32 to vector<16x1xf32>
    %16 = arith.addf %14, %15 : vector<16x1xf32>
    %17 = math.rsqrt %16 : vector<16x1xf32>
    %18 = vector.broadcast %17 : vector<16x1xf32> to vector<16x32xf32>
    %19 = arith.mulf %9, %18 : vector<16x32xf32>
    %20 = vector.broadcast %2 : vector<1x32xf32> to vector<16x32xf32>
    %21 = arith.mulf %19, %20 : vector<16x32xf32>
    %22 = vector.broadcast %3 : vector<1x32xf32> to vector<16x32xf32>
    %23 = arith.addf %21, %22 : vector<16x32xf32>
    %24 = arith.truncf %23 : vector<16x32xf32> to vector<16x32xbf16>
    %c0_10 = arith.constant 0 : index
    %c0_11 = arith.constant 0 : index
    %25 = vector.load %arg4[%c0_10, %c0_11] : memref<32x96xbf16, #tpu.memory_space<vmem>>, vector<32x96xbf16>
    %cst_12 = arith.constant dense<0.000000e+00> : vector<16x96xf32>
    %26 = tpu.matmul %24, %25, %cst_12 {dimension_numbers = #tpu.dot_dimension_numbers<[1], [0], [0], [1], [0, 0, 1, 1], [], []>} : vector<16x32xbf16>, vector<32x96xbf16>, vector<16x96xf32> -> vector<16x96xf32>
    %27 = vector.extract_strided_slice %26 {offsets = [0, 0], sizes = [16, 32], strides = [1, 1]} : vector<16x96xf32> to vector<16x32xf32>
    %cst_13 = arith.constant 2.500000e-01 : f32
    %28 = vector.broadcast %cst_13 : f32 to vector<16x32xf32>
    %29 = arith.mulf %27, %28 : vector<16x32xf32>
    %30 = vector.extract_strided_slice %26 {offsets = [0, 32], sizes = [16, 32], strides = [1, 1]} : vector<16x96xf32> to vector<16x32xf32>
    %31 = vector.extract_strided_slice %26 {offsets = [0, 64], sizes = [16, 32], strides = [1, 1]} : vector<16x96xf32> to vector<16x32xf32>
    %32 = arith.truncf %29 : vector<16x32xf32> to vector<16x32xbf16>
    %33 = arith.truncf %30 : vector<16x32xf32> to vector<16x32xbf16>
    %34 = arith.truncf %31 : vector<16x32xf32> to vector<16x32xbf16>
    %35 = vector.extract_strided_slice %32 {offsets = [0, 0], sizes = [8, 16], strides = [1, 1]} : vector<16x32xbf16> to vector<8x16xbf16>
    %36 = vector.extract_strided_slice %33 {offsets = [0, 0], sizes = [8, 16], strides = [1, 1]} : vector<16x32xbf16> to vector<8x16xbf16>
    %37 = vector.extract_strided_slice %34 {offsets = [0, 0], sizes = [8, 16], strides = [1, 1]} : vector<16x32xbf16> to vector<8x16xbf16>
    %cst_14 = arith.constant dense<0.000000e+00> : vector<8x8xf32>
    %38 = tpu.matmul %35, %36, %cst_14 {dimension_numbers = #tpu.dot_dimension_numbers<[1], [1], [0], [0], [0, 0, 1, 0], [], []>} : vector<8x16xbf16>, vector<8x16xbf16>, vector<8x8xf32> -> vector<8x8xf32>
    %cst_15 = arith.constant dense<0xFF800000> : vector<8xf32>
    %39 = vector.multi_reduction <maximumf>, %38, %cst_15 [1] : vector<8x8xf32> to vector<8xf32>
    %40 = vector.shape_cast %39 : vector<8xf32> to vector<8x1xf32>
    %41 = vector.broadcast %40 : vector<8x1xf32> to vector<8x8xf32>
    %42 = arith.subf %38, %41 : vector<8x8xf32>
    %43 = math.exp %42 : vector<8x8xf32>
    %cst_16 = arith.constant dense<0.000000e+00> : vector<8xf32>
    %44 = vector.multi_reduction <add>, %43, %cst_16 [1] : vector<8x8xf32> to vector<8xf32>
    %45 = vector.shape_cast %44 : vector<8xf32> to vector<8x1xf32>
    %46 = tpu.reciprocal %45 {approx = true} : vector<8x1xf32> -> vector<8x1xf32>
    %47 = vector.broadcast %46 : vector<8x1xf32> to vector<8x8xf32>
    %48 = arith.mulf %43, %47 : vector<8x8xf32>
    %49 = arith.truncf %48 : vector<8x8xf32> to vector<8x8xbf16>
    %cst_17 = arith.constant dense<0.000000e+00> : vector<8x16xf32>
    %50 = tpu.matmul %49, %37, %cst_17 {dimension_numbers = #tpu.dot_dimension_numbers<[1], [0], [0], [1], [0, 0, 1, 1], [], []>} : vector<8x8xbf16>, vector<8x16xbf16>, vector<8x16xf32> -> vector<8x16xf32>
    %51 = arith.truncf %50 : vector<8x16xf32> to vector<8x16xbf16>
    %52 = vector.extract_strided_slice %32 {offsets = [0, 16], sizes = [8, 16], strides = [1, 1]} : vector<16x32xbf16> to vector<8x16xbf16>
    %53 = vector.extract_strided_slice %33 {offsets = [0, 16], sizes = [8, 16], strides = [1, 1]} : vector<16x32xbf16> to vector<8x16xbf16>
    %54 = vector.extract_strided_slice %34 {offsets = [0, 16], sizes = [8, 16], strides = [1, 1]} : vector<16x32xbf16> to vector<8x16xbf16>
    %cst_18 = arith.constant dense<0.000000e+00> : vector<8x8xf32>
    %55 = tpu.matmul %52, %53, %cst_18 {dimension_numbers = #tpu.dot_dimension_numbers<[1], [1], [0], [0], [0, 0, 1, 0], [], []>} : vector<8x16xbf16>, vector<8x16xbf16>, vector<8x8xf32> -> vector<8x8xf32>
    %cst_19 = arith.constant dense<0xFF800000> : vector<8xf32>
    %56 = vector.multi_reduction <maximumf>, %55, %cst_19 [1] : vector<8x8xf32> to vector<8xf32>
    %57 = vector.shape_cast %56 : vector<8xf32> to vector<8x1xf32>
    %58 = vector.broadcast %57 : vector<8x1xf32> to vector<8x8xf32>
    %59 = arith.subf %55, %58 : vector<8x8xf32>
    %60 = math.exp %59 : vector<8x8xf32>
    %cst_20 = arith.constant dense<0.000000e+00> : vector<8xf32>
    %61 = vector.multi_reduction <add>, %60, %cst_20 [1] : vector<8x8xf32> to vector<8xf32>
    %62 = vector.shape_cast %61 : vector<8xf32> to vector<8x1xf32>
    %63 = tpu.reciprocal %62 {approx = true} : vector<8x1xf32> -> vector<8x1xf32>
    %64 = vector.broadcast %63 : vector<8x1xf32> to vector<8x8xf32>
    %65 = arith.mulf %60, %64 : vector<8x8xf32>
    %66 = arith.truncf %65 : vector<8x8xf32> to vector<8x8xbf16>
    %cst_21 = arith.constant dense<0.000000e+00> : vector<8x16xf32>
    %67 = tpu.matmul %66, %54, %cst_21 {dimension_numbers = #tpu.dot_dimension_numbers<[1], [0], [0], [1], [0, 0, 1, 1], [], []>} : vector<8x8xbf16>, vector<8x16xbf16>, vector<8x16xf32> -> vector<8x16xf32>
    %68 = arith.truncf %67 : vector<8x16xf32> to vector<8x16xbf16>
    %69 = tpu.concatenate %51, %68 in 1 : vector<8x16xbf16>, vector<8x16xbf16> -> vector<8x32xbf16>
    %70 = vector.extract_strided_slice %32 {offsets = [8, 0], sizes = [8, 16], strides = [1, 1]} : vector<16x32xbf16> to vector<8x16xbf16>
    %71 = vector.extract_strided_slice %33 {offsets = [8, 0], sizes = [8, 16], strides = [1, 1]} : vector<16x32xbf16> to vector<8x16xbf16>
    %72 = vector.extract_strided_slice %34 {offsets = [8, 0], sizes = [8, 16], strides = [1, 1]} : vector<16x32xbf16> to vector<8x16xbf16>
    %cst_22 = arith.constant dense<0.000000e+00> : vector<8x8xf32>
    %73 = tpu.matmul %70, %71, %cst_22 {dimension_numbers = #tpu.dot_dimension_numbers<[1], [1], [0], [0], [0, 0, 1, 0], [], []>} : vector<8x16xbf16>, vector<8x16xbf16>, vector<8x8xf32> -> vector<8x8xf32>
    %cst_23 = arith.constant dense<0xFF800000> : vector<8xf32>
    %74 = vector.multi_reduction <maximumf>, %73, %cst_23 [1] : vector<8x8xf32> to vector<8xf32>
    %75 = vector.shape_cast %74 : vector<8xf32> to vector<8x1xf32>
    %76 = vector.broadcast %75 : vector<8x1xf32> to vector<8x8xf32>
    %77 = arith.subf %73, %76 : vector<8x8xf32>
    %78 = math.exp %77 : vector<8x8xf32>
    %cst_24 = arith.constant dense<0.000000e+00> : vector<8xf32>
    %79 = vector.multi_reduction <add>, %78, %cst_24 [1] : vector<8x8xf32> to vector<8xf32>
    %80 = vector.shape_cast %79 : vector<8xf32> to vector<8x1xf32>
    %81 = tpu.reciprocal %80 {approx = true} : vector<8x1xf32> -> vector<8x1xf32>
    %82 = vector.broadcast %81 : vector<8x1xf32> to vector<8x8xf32>
    %83 = arith.mulf %78, %82 : vector<8x8xf32>
    %84 = arith.truncf %83 : vector<8x8xf32> to vector<8x8xbf16>
    %cst_25 = arith.constant dense<0.000000e+00> : vector<8x16xf32>
    %85 = tpu.matmul %84, %72, %cst_25 {dimension_numbers = #tpu.dot_dimension_numbers<[1], [0], [0], [1], [0, 0, 1, 1], [], []>} : vector<8x8xbf16>, vector<8x16xbf16>, vector<8x16xf32> -> vector<8x16xf32>
    %86 = arith.truncf %85 : vector<8x16xf32> to vector<8x16xbf16>
    %87 = vector.extract_strided_slice %32 {offsets = [8, 16], sizes = [8, 16], strides = [1, 1]} : vector<16x32xbf16> to vector<8x16xbf16>
    %88 = vector.extract_strided_slice %33 {offsets = [8, 16], sizes = [8, 16], strides = [1, 1]} : vector<16x32xbf16> to vector<8x16xbf16>
    %89 = vector.extract_strided_slice %34 {offsets = [8, 16], sizes = [8, 16], strides = [1, 1]} : vector<16x32xbf16> to vector<8x16xbf16>
    %cst_26 = arith.constant dense<0.000000e+00> : vector<8x8xf32>
    %90 = tpu.matmul %87, %88, %cst_26 {dimension_numbers = #tpu.dot_dimension_numbers<[1], [1], [0], [0], [0, 0, 1, 0], [], []>} : vector<8x16xbf16>, vector<8x16xbf16>, vector<8x8xf32> -> vector<8x8xf32>
    %cst_27 = arith.constant dense<0xFF800000> : vector<8xf32>
    %91 = vector.multi_reduction <maximumf>, %90, %cst_27 [1] : vector<8x8xf32> to vector<8xf32>
    %92 = vector.shape_cast %91 : vector<8xf32> to vector<8x1xf32>
    %93 = vector.broadcast %92 : vector<8x1xf32> to vector<8x8xf32>
    %94 = arith.subf %90, %93 : vector<8x8xf32>
    %95 = math.exp %94 : vector<8x8xf32>
    %cst_28 = arith.constant dense<0.000000e+00> : vector<8xf32>
    %96 = vector.multi_reduction <add>, %95, %cst_28 [1] : vector<8x8xf32> to vector<8xf32>
    %97 = vector.shape_cast %96 : vector<8xf32> to vector<8x1xf32>
    %98 = tpu.reciprocal %97 {approx = true} : vector<8x1xf32> -> vector<8x1xf32>
    %99 = vector.broadcast %98 : vector<8x1xf32> to vector<8x8xf32>
    %100 = arith.mulf %95, %99 : vector<8x8xf32>
    %101 = arith.truncf %100 : vector<8x8xf32> to vector<8x8xbf16>
    %cst_29 = arith.constant dense<0.000000e+00> : vector<8x16xf32>
    %102 = tpu.matmul %101, %89, %cst_29 {dimension_numbers = #tpu.dot_dimension_numbers<[1], [0], [0], [1], [0, 0, 1, 1], [], []>} : vector<8x8xbf16>, vector<8x16xbf16>, vector<8x16xf32> -> vector<8x16xf32>
    %103 = arith.truncf %102 : vector<8x16xf32> to vector<8x16xbf16>
    %104 = tpu.concatenate %86, %103 in 1 : vector<8x16xbf16>, vector<8x16xbf16> -> vector<8x32xbf16>
    %105 = tpu.concatenate %69, %104 in 0 : vector<8x32xbf16>, vector<8x32xbf16> -> vector<16x32xbf16>
    %c0_30 = arith.constant 0 : index
    %c0_31 = arith.constant 0 : index
    %106 = vector.load %arg5[%c0_30, %c0_31] : memref<32x32xbf16, #tpu.memory_space<vmem>>, vector<32x32xbf16>
    %cst_32 = arith.constant dense<0.000000e+00> : vector<16x32xf32>
    %107 = tpu.matmul %105, %106, %cst_32 {dimension_numbers = #tpu.dot_dimension_numbers<[1], [0], [0], [1], [0, 0, 1, 1], [], []>} : vector<16x32xbf16>, vector<32x32xbf16>, vector<16x32xf32> -> vector<16x32xf32>
    %c0_33 = arith.constant 0 : index
    %c0_34 = arith.constant 0 : index
    %108 = vector.load %arg6[%c0_33, %c0_34] : memref<1x32xf32, #tpu.memory_space<vmem>>, vector<1x32xf32>
    %109 = vector.broadcast %108 : vector<1x32xf32> to vector<16x32xf32>
    %110 = arith.addf %107, %109 : vector<16x32xf32>
    %111 = arith.addf %1, %110 : vector<16x32xf32>
    %112 = vector.shape_cast %111 : vector<16x32xf32> to vector<2x8x32xf32>
    %c0_35 = arith.constant 0 : index
    %c0_36 = arith.constant 0 : index
    %c0_37 = arith.constant 0 : index
    %113 = vector.load %arg7[%c0_35, %c0_36, %c0_37] : memref<2x8x32xf32, #tpu.memory_space<vmem>>, vector<2x8x32xf32>
    tpu.vector_store %arg7[%c0_35, %c0_36, %c0_37], %112 {strides = array<i32>} : memref<2x8x32xf32, #tpu.memory_space<vmem>>, vector<2x8x32xf32>,
    return
  }
  func.func @transform_0(%arg0: i32) -> (i32, i32, i32) {
    %c0_i32 = arith.constant 0 : i32
    %c0_i32_0 = arith.constant 0 : i32
    %c0_i32_1 = arith.constant 0 : i32
    return %arg0, %c0_i32, %c0_i32_0 : i32, i32, i32
  }
  func.func @transform_1(%arg0: i32) -> (i32, i32) {
    %c0_i32 = arith.constant 0 : i32
    %c0_i32_0 = arith.constant 0 : i32
    %c0_i32_1 = arith.constant 0 : i32
    return %c0_i32, %c0_i32_0 : i32, i32
  }
  func.func @transform_2(%arg0: i32) -> (i32, i32) {
    %c0_i32 = arith.constant 0 : i32
    %c0_i32_0 = arith.constant 0 : i32
    %c0_i32_1 = arith.constant 0 : i32
    return %c0_i32, %c0_i32_0 : i32, i32
  }
  func.func @transform_3(%arg0: i32) -> (i32, i32) {
    %c0_i32 = arith.constant 0 : i32
    %c0_i32_0 = arith.constant 0 : i32
    %c0_i32_1 = arith.constant 0 : i32
    return %c0_i32, %c0_i32_0 : i32, i32
  }
  func.func @transform_4(%arg0: i32) -> (i32, i32) {
    %c0_i32 = arith.constant 0 : i32
    %c0_i32_0 = arith.constant 0 : i32
    %c0_i32_1 = arith.constant 0 : i32
    return %c0_i32, %c0_i32_0 : i32, i32
  }
  func.func @transform_5(%arg0: i32) -> (i32, i32) {
    %c0_i32 = arith.constant 0 : i32
    %c0_i32_0 = arith.constant 0 : i32
    %c0_i32_1 = arith.constant 0 : i32
    return %c0_i32, %c0_i32_0 : i32, i32
  }
  func.func @transform_6(%arg0: i32) -> (i32, i32, i32) {
    %c0_i32 = arith.constant 0 : i32
    %c0_i32_0 = arith.constant 0 : i32
    %c0_i32_1 = arith.constant 0 : i32
    return %arg0, %c0_i32, %c0_i32_0 : i32, i32, i32
  }
}

module attributes {stable_mosaic.version = 11 : i64} {
  func.func @_self_attn_kernel(%arg0: i32, %arg1: memref<2x8x32xf32, #tpu.memory_space<vmem>>, %arg2: memref<1x32xf32, #tpu.memory_space<vmem>>, %arg3: memref<1x32xf32, #tpu.memory_space<vmem>>, %arg4: memref<32x96xbf16, #tpu.memory_space<vmem>>, %arg5: memref<32x32xbf16, #tpu.memory_space<vmem>>, %arg6: memref<1x32xf32, #tpu.memory_space<vmem>>, %arg7: memref<2x8x32xf32, #tpu.memory_space<vmem>>) attributes {dimension_semantics = [#tpu.dimension_semantics<parallel>], iteration_bounds = array<i64: 1>, scalar_prefetch = 0 : i64, scratch_operands = 0 : i64, tpu.core_type = #tpu.core_type<tc>, window_params = [{transform_indices = @transform_0, window_bounds = array<i64: 2, 8, 32>}, {pipeline_mode = #tpu.pipeline_mode<synchronous>, transform_indices = @transform_1, window_bounds = array<i64: 1, 32>}, {pipeline_mode = #tpu.pipeline_mode<synchronous>, transform_indices = @transform_2, window_bounds = array<i64: 1, 32>}, {pipeline_mode = #tpu.pipeline_mode<synchronous>, transform_indices = @transform_3, window_bounds = array<i64: 32, 96>}, {pipeline_mode = #tpu.pipeline_mode<synchronous>, transform_indices = @transform_4, window_bounds = array<i64: 32, 32>}, {pipeline_mode = #tpu.pipeline_mode<synchronous>, transform_indices = @transform_5, window_bounds = array<i64: 1, 32>}, {transform_indices = @transform_6, window_bounds = array<i64: 2, 8, 32>}]} {
    %c0 = arith.constant 0 : index
    %c0_0 = arith.constant 0 : index
    %c0_1 = arith.constant 0 : index
    %0 = vector.load %arg1[%c0, %c0_0, %c0_1] : memref<2x8x32xf32, #tpu.memory_space<vmem>>, vector<2x8x32xf32>
    %1 = vector.shape_cast %0 : vector<2x8x32xf32> to vector<16x32xf32>
    %c0_2 = arith.constant 0 : index
    %c0_3 = arith.constant 0 : index
    %2 = vector.load %arg2[%c0_2, %c0_3] : memref<1x32xf32, #tpu.memory_space<vmem>>, vector<1x32xf32>
    %c0_4 = arith.constant 0 : index
    %c0_5 = arith.constant 0 : index
    %3 = vector.load %arg3[%c0_4, %c0_5] : memref<1x32xf32, #tpu.memory_space<vmem>>, vector<1x32xf32>
    %cst = arith.constant dense<0.000000e+00> : vector<16xf32>
    %4 = vector.multi_reduction <add>, %1, %cst [1] : vector<16x32xf32> to vector<16xf32>
    %5 = vector.shape_cast %4 : vector<16xf32> to vector<16x1xf32>
    %cst_6 = arith.constant 3.200000e+01 : f32
    %6 = vector.broadcast %cst_6 : f32 to vector<16x1xf32>
    %7 = arith.divf %5, %6 : vector<16x1xf32>
    %8 = vector.broadcast %7 : vector<16x1xf32> to vector<16x32xf32>
    %9 = arith.subf %1, %8 : vector<16x32xf32>
    %10 = arith.mulf %9, %9 : vector<16x32xf32>
    %cst_7 = arith.constant dense<0.000000e+00> : vector<16xf32>
    %11 = vector.multi_reduction <add>, %10, %cst_7 [1] : vector<16x32xf32> to vector<16xf32>
    %12 = vector.shape_cast %11 : vector<16xf32> to vector<16x1xf32>
    %cst_8 = arith.constant 3.200000e+01 : f32
    %13 = vector.broadcast %cst_8 : f32 to vector<16x1xf32>
    %14 = arith.divf %12, %13 : vector<16x1xf32>
    %cst_9 = arith.constant 9.99999974E-6 : f32
    %15 = vector.broadcast %cst_9 : f32 to vector<16x1xf32>
    %16 = arith.addf %14, %15 : vector<16x1xf32>
    %17 = math.rsqrt %16 : vector<16x1xf32>
    %18 = vector.broadcast %17 : vector<16x1xf32> to vector<16x32xf32>
    %19 = arith.mulf %9, %18 : vector<16x32xf32>
    %20 = vector.broadcast %2 : vector<1x32xf32> to vector<16x32xf32>
    %21 = arith.mulf %19, %20 : vector<16x32xf32>
    %22 = vector.broadcast %3 : vector<1x32xf32> to vector<16x32xf32>
    %23 = arith.addf %21, %22 : vector<16x32xf32>
    %24 = arith.truncf %23 : vector<16x32xf32> to vector<16x32xbf16>
    %c0_10 = arith.constant 0 : index
    %c0_11 = arith.constant 0 : index
    %25 = vector.load %arg4[%c0_10, %c0_11] : memref<32x96xbf16, #tpu.memory_space<vmem>>, vector<32x96xbf16>
    %cst_12 = arith.constant dense<0.000000e+00> : vector<16x96xf32>
    %26 = tpu.matmul %24, %25, %cst_12 {dimension_numbers = #tpu.dot_dimension_numbers<[1], [0], [0], [1], [0, 0, 1, 1], [], []>} : vector<16x32xbf16>, vector<32x96xbf16>, vector<16x96xf32> -> vector<16x96xf32>
    %27 = vector.extract_strided_slice %26 {offsets = [0, 0], sizes = [16, 32], strides = [1, 1]} : vector<16x96xf32> to vector<16x32xf32>
    %cst_13 = arith.constant 2.500000e-01 : f32
    %28 = vector.broadcast %cst_13 : f32 to vector<16x32xf32>
    %29 = arith.mulf %27, %28 : vector<16x32xf32>
    %30 = vector.extract_strided_slice %26 {offsets = [0, 32], sizes = [16, 32], strides = [1, 1]} : vector<16x96xf32> to vector<16x32xf32>
    %31 = vector.extract_strided_slice %26 {offsets = [0, 64], sizes = [16, 32], strides = [1, 1]} : vector<16x96xf32> to vector<16x32xf32>
    %32 = arith.truncf %29 : vector<16x32xf32> to vector<16x32xbf16>
    %33 = arith.truncf %30 : vector<16x32xf32> to vector<16x32xbf16>
    %34 = arith.truncf %31 : vector<16x32xf32> to vector<16x32xbf16>
    %35 = vector.extract_strided_slice %32 {offsets = [0, 0], sizes = [8, 16], strides = [1, 1]} : vector<16x32xbf16> to vector<8x16xbf16>
    %36 = vector.extract_strided_slice %33 {offsets = [0, 0], sizes = [8, 16], strides = [1, 1]} : vector<16x32xbf16> to vector<8x16xbf16>
    %37 = vector.extract_strided_slice %34 {offsets = [0, 0], sizes = [8, 16], strides = [1, 1]} : vector<16x32xbf16> to vector<8x16xbf16>
    %cst_14 = arith.constant dense<0.000000e+00> : vector<8x8xf32>
    %38 = tpu.matmul %35, %36, %cst_14 {dimension_numbers = #tpu.dot_dimension_numbers<[1], [1], [0], [0], [0, 0, 1, 0], [], []>} : vector<8x16xbf16>, vector<8x16xbf16>, vector<8x8xf32> -> vector<8x8xf32>
    %cst_15 = arith.constant dense<0xFF800000> : vector<8xf32>
    %39 = vector.multi_reduction <maximumf>, %38, %cst_15 [1] : vector<8x8xf32> to vector<8xf32>
    %40 = vector.shape_cast %39 : vector<8xf32> to vector<8x1xf32>
    %41 = vector.broadcast %40 : vector<8x1xf32> to vector<8x8xf32>
    %42 = arith.subf %38, %41 : vector<8x8xf32>
    %43 = math.exp %42 : vector<8x8xf32>
    %cst_16 = arith.constant dense<0.000000e+00> : vector<8xf32>
    %44 = vector.multi_reduction <add>, %43, %cst_16 [1] : vector<8x8xf32> to vector<8xf32>
    %45 = vector.shape_cast %44 : vector<8xf32> to vector<8x1xf32>
    %46 = tpu.reciprocal %45 {approx = true} : vector<8x1xf32> -> vector<8x1xf32>
    %47 = vector.broadcast %46 : vector<8x1xf32> to vector<8x8xf32>
    %48 = arith.mulf %43, %47 : vector<8x8xf32>
    %49 = arith.truncf %48 : vector<8x8xf32> to vector<8x8xbf16>
    %cst_17 = arith.constant dense<0.000000e+00> : vector<8x16xf32>
    %50 = tpu.matmul %49, %37, %cst_17 {dimension_numbers = #tpu.dot_dimension_numbers<[1], [0], [0], [1], [0, 0, 1, 1], [], []>} : vector<8x8xbf16>, vector<8x16xbf16>, vector<8x16xf32> -> vector<8x16xf32>
    %51 = arith.truncf %50 : vector<8x16xf32> to vector<8x16xbf16>
    %52 = vector.extract_strided_slice %32 {offsets = [0, 16], sizes = [8, 16], strides = [1, 1]} : vector<16x32xbf16> to vector<8x16xbf16>
    %53 = vector.extract_strided_slice %33 {offsets = [0, 16], sizes = [8, 16], strides = [1, 1]} : vector<16x32xbf16> to vector<8x16xbf16>
    %54 = vector.extract_strided_slice %34 {offsets = [0, 16], sizes = [8, 16], strides = [1, 1]} : vector<16x32xbf16> to vector<8x16xbf16>
    %cst_18 = arith.constant dense<0.000000e+00> : vector<8x8xf32>
    %55 = tpu.matmul %52, %53, %cst_18 {dimension_numbers = #tpu.dot_dimension_numbers<[1], [1], [0], [0], [0, 0, 1, 0], [], []>} : vector<8x16xbf16>, vector<8x16xbf16>, vector<8x8xf32> -> vector<8x8xf32>
    %cst_19 = arith.constant dense<0xFF800000> : vector<8xf32>
    %56 = vector.multi_reduction <maximumf>, %55, %cst_19 [1] : vector<8x8xf32> to vector<8xf32>
    %57 = vector.shape_cast %56 : vector<8xf32> to vector<8x1xf32>
    %58 = vector.broadcast %57 : vector<8x1xf32> to vector<8x8xf32>
    %59 = arith.subf %55, %58 : vector<8x8xf32>
    %60 = math.exp %59 : vector<8x8xf32>
    %cst_20 = arith.constant dense<0.000000e+00> : vector<8xf32>
    %61 = vector.multi_reduction <add>, %60, %cst_20 [1] : vector<8x8xf32> to vector<8xf32>
    %62 = vector.shape_cast %61 : vector<8xf32> to vector<8x1xf32>
    %63 = tpu.reciprocal %62 {approx = true} : vector<8x1xf32> -> vector<8x1xf32>
    %64 = vector.broadcast %63 : vector<8x1xf32> to vector<8x8xf32>
    %65 = arith.mulf %60, %64 : vector<8x8xf32>
    %66 = arith.truncf %65 : vector<8x8xf32> to vector<8x8xbf16>
    %cst_21 = arith.constant dense<0.000000e+00> : vector<8x16xf32>
    %67 = tpu.matmul %66, %54, %cst_21 {dimension_numbers = #tpu.dot_dimension_numbers<[1], [0], [0], [1], [0, 0, 1, 1], [], []>} : vector<8x8xbf16>, vector<8x16xbf16>, vector<8x16xf32> -> vector<8x16xf32>
    %68 = arith.truncf %67 : vector<8x16xf32> to vector<8x16xbf16>
    %69 = tpu.concatenate %51, %68 in 1 : vector<8x16xbf16>, vector<8x16xbf16> -> vector<8x32xbf16>
    %70 = vector.extract_strided_slice %32 {offsets = [8, 0], sizes = [8, 16], strides = [1, 1]} : vector<16x32xbf16> to vector<8x16xbf16>
    %71 = vector.extract_strided_slice %33 {offsets = [8, 0], sizes = [8, 16], strides = [1, 1]} : vector<16x32xbf16> to vector<8x16xbf16>
    %72 = vector.extract_strided_slice %34 {offsets = [8, 0], sizes = [8, 16], strides = [1, 1]} : vector<16x32xbf16> to vector<8x16xbf16>
    %cst_22 = arith.constant dense<0.000000e+00> : vector<8x8xf32>
    %73 = tpu.matmul %70, %71, %cst_22 {dimension_numbers = #tpu.dot_dimension_numbers<[1], [1], [0], [0], [0, 0, 1, 0], [], []>} : vector<8x16xbf16>, vector<8x16xbf16>, vector<8x8xf32> -> vector<8x8xf32>
    %cst_23 = arith.constant dense<0xFF800000> : vector<8xf32>
    %74 = vector.multi_reduction <maximumf>, %73, %cst_23 [1] : vector<8x8xf32> to vector<8xf32>
    %75 = vector.shape_cast %74 : vector<8xf32> to vector<8x1xf32>
    %76 = vector.broadcast %75 : vector<8x1xf32> to vector<8x8xf32>
    %77 = arith.subf %73, %76 : vector<8x8xf32>
    %78 = math.exp %77 : vector<8x8xf32>
    %cst_24 = arith.constant dense<0.000000e+00> : vector<8xf32>
    %79 = vector.multi_reduction <add>, %78, %cst_24 [1] : vector<8x8xf32> to vector<8xf32>
    %80 = vector.shape_cast %79 : vector<8xf32> to vector<8x1xf32>
    %81 = tpu.reciprocal %80 {approx = true} : vector<8x1xf32> -> vector<8x1xf32>
    %82 = vector.broadcast %81 : vector<8x1xf32> to vector<8x8xf32>
    %83 = arith.mulf %78, %82 : vector<8x8xf32>
    %84 = arith.truncf %83 : vector<8x8xf32> to vector<8x8xbf16>
    %cst_25 = arith.constant dense<0.000000e+00> : vector<8x16xf32>
    %85 = tpu.matmul %84, %72, %cst_25 {dimension_numbers = #tpu.dot_dimension_numbers<[1], [0], [0], [1], [0, 0, 1, 1], [], []>} : vector<8x8xbf16>, vector<8x16xbf16>, vector<8x16xf32> -> vector<8x16xf32>
    %86 = arith.truncf %85 : vector<8x16xf32> to vector<8x16xbf16>
    %87 = vector.extract_strided_slice %32 {offsets = [8, 16], sizes = [8, 16], strides = [1, 1]} : vector<16x32xbf16> to vector<8x16xbf16>
    %88 = vector.extract_strided_slice %33 {offsets = [8, 16], sizes = [8, 16], strides = [1, 1]} : vector<16x32xbf16> to vector<8x16xbf16>
    %89 = vector.extract_strided_slice %34 {offsets = [8, 16], sizes = [8, 16], strides = [1, 1]} : vector<16x32xbf16> to vector<8x16xbf16>
    %cst_26 = arith.constant dense<0.000000e+00> : vector<8x8xf32>
    %90 = tpu.matmul %87, %88, %cst_26 {dimension_numbers = #tpu.dot_dimension_numbers<[1], [1], [0], [0], [0, 0, 1, 0], [], []>} : vector<8x16xbf16>, vector<8x16xbf16>, vector<8x8xf32> -> vector<8x8xf32>
    %cst_27 = arith.constant dense<0xFF800000> : vector<8xf32>
    %91 = vector.multi_reduction <maximumf>, %90, %cst_27 [1] : vector<8x8xf32> to vector<8xf32>
    %92 = vector.shape_cast %91 : vector<8xf32> to vector<8x1xf32>
    %93 = vector.broadcast %92 : vector<8x1xf32> to vector<8x8xf32>
    %94 = arith.subf %90, %93 : vector<8x8xf32>
    %95 = math.exp %94 : vector<8x8xf32>
    %cst_28 = arith.constant dense<0.000000e+00> : vector<8xf32>
    %96 = vector.multi_reduction <add>, %95, %cst_28 [1] : vector<8x8xf32> to vector<8xf32>
    %97 = vector.shape_cast %96 : vector<8xf32> to vector<8x1xf32>
    %98 = tpu.reciprocal %97 {approx = true} : vector<8x1xf32> -> vector<8x1xf32>
    %99 = vector.broadcast %98 : vector<8x1xf32> to vector<8x8xf32>
    %100 = arith.mulf %95, %99 : vector<8x8xf32>
    %101 = arith.truncf %100 : vector<8x8xf32> to vector<8x8xbf16>
    %cst_29 = arith.constant dense<0.000000e+00> : vector<8x16xf32>
    %102 = tpu.matmul %101, %89, %cst_29 {dimension_numbers = #tpu.dot_dimension_numbers<[1], [0], [0], [1], [0, 0, 1, 1], [], []>} : vector<8x8xbf16>, vector<8x16xbf16>, vector<8x16xf32> -> vector<8x16xf32>
    %103 = arith.truncf %102 : vector<8x16xf32> to vector<8x16xbf16>
    %104 = tpu.concatenate %86, %103 in 1 : vector<8x16xbf16>, vector<8x16xbf16> -> vector<8x32xbf16>
    %105 = tpu.concatenate %69, %104 in 0 : vector<8x32xbf16>, vector<8x32xbf16> -> vector<16x32xbf16>
    %c0_30 = arith.constant 0 : index
    %c0_31 = arith.constant 0 : index
    %106 = vector.load %arg5[%c0_30, %c0_31] : memref<32x32xbf16, #tpu.memory_space<vmem>>, vector<32x32xbf16>
    %cst_32 = arith.constant dense<0.000000e+00> : vector<16x32xf32>
    %107 = tpu.matmul %105, %106, %cst_32 {dimension_numbers = #tpu.dot_dimension_numbers<[1], [0], [0], [1], [0, 0, 1, 1], [], []>} : vector<16x32xbf16>, vector<32x32xbf16>, vector<16x32xf32> -> vector<16x32xf32>
    %c0_33 = arith.constant 0 : index
    %c0_34 = arith.constant 0 : index
    %108 = vector.load %arg6[%c0_33, %c0_34] : memref<1x32xf32, #tpu.memory_space<vmem>>, vector<1x32xf32>
    %109 = vector.broadcast %108 : vector<1x32xf32> to vector<16x32xf32>
    %110 = arith.addf %107, %109 : vector<16x32xf32>
    %111 = arith.addf %1, %110 : vector<16x32xf32>
    %112 = vector.shape_cast %111 : vector<16x32xf32> to vector<2x8x32xf32>
    %c0_35 = arith.constant 0 : index
    %c0_36 = arith.constant 0 : index
    %c0_37 = arith.constant 0 : index
    %113 = vector.load %arg7[%c0_35, %c0_36, %c0_37] : memref<2x8x32xf32, #tpu.memory_space<vmem>>, vector<2x8x32xf32>
    tpu.vector_store %arg7[%c0_35, %c0_36, %c0_37], %112 {strides = array<i32>} : memref<2x8x32xf32, #tpu.memory_space<vmem>>, vector<2x8x32xf32>,
    return
  }
  func.func @transform_0(%arg0: i32) -> (i32, i32, i32) {
    %c0_i32 = arith.constant 0 : i32
    %c0_i32_0 = arith.constant 0 : i32
    %c0_i32_1 = arith.constant 0 : i32
    return %arg0, %c0_i32, %c0_i32_0 : i32, i32, i32
  }
  func.func @transform_1(%arg0: i32) -> (i32, i32) {
    %c0_i32 = arith.constant 0 : i32
    %c0_i32_0 = arith.constant 0 : i32
    %c0_i32_1 = arith.constant 0 : i32
    return %c0_i32, %c0_i32_0 : i32, i32
  }
  func.func @transform_2(%arg0: i32) -> (i32, i32) {
    %c0_i32 = arith.constant 0 : i32
    %c0_i32_0 = arith.constant 0 : i32
    %c0_i32_1 = arith.constant 0 : i32
    return %c0_i32, %c0_i32_0 : i32, i32
  }
  func.func @transform_3(%arg0: i32) -> (i32, i32) {
    %c0_i32 = arith.constant 0 : i32
    %c0_i32_0 = arith.constant 0 : i32
    %c0_i32_1 = arith.constant 0 : i32
    return %c0_i32, %c0_i32_0 : i32, i32
  }
  func.func @transform_4(%arg0: i32) -> (i32, i32) {
    %c0_i32 = arith.constant 0 : i32
    %c0_i32_0 = arith.constant 0 : i32
    %c0_i32_1 = arith.constant 0 : i32
    return %c0_i32, %c0_i32_0 : i32, i32
  }
  func.func @transform_5(%arg0: i32) -> (i32, i32) {
    %c0_i32 = arith.constant 0 : i32
    %c0_i32_0 = arith.constant 0 : i32
    %c0_i32_1 = arith.constant 0 : i32
    return %c0_i32, %c0_i32_0 : i32, i32
  }
  func.func @transform_6(%arg0: i32) -> (i32, i32, i32) {
    %c0_i32 = arith.constant 0 : i32
    %c0_i32_0 = arith.constant 0 : i32
    %c0_i32_1 = arith.constant 0 : i32
    return %arg0, %c0_i32, %c0_i32_0 : i32, i32, i32
  }
}

</mosaic_0001>

<bundles_post_ra>
// kernel: multi_stream_attention.2
= control target key start
LH: loop header
LB: loop body
LE: loop exit
PB: predicated region body
PF: predicated region fallthrough
CT: control target
= control target key end

     0   :  { %11 = vsyncpa [#allocation3], 0  ;;  %s1130_s0 = inlined_call_operand.hbm [shape: f32[2,8,32], index: 0, kind: input, shape index: {}]   ;;  %s1131_s1 = inlined_call_operand.vmem [shape: f32[1,32], index: 1, kind: input, shape index: {}]   ;;  %s1132_s2 = inlined_call_operand.vmem [shape: f32[1,32], index: 2, kind: input, shape index: {}]   ;;  %s1133_s3 = inlined_call_operand.vmem [shape: bf16[32,96], index: 3, kind: input, shape index: {}]   ;;  %s1134_s4 = inlined_call_operand.hbm [shape: bf16[32,32], index: 4, kind: input, shape index: {}]   ;;  %s1135_s5 = inlined_call_operand.vmem [shape: f32[1,32], index: 5, kind: input, shape index: {}]   ;;  %s1136_s6 = inlined_call_operand.hbm [shape: f32[2,8,32], index: 6, kind: output, shape index: {}]  }
   0x1   :  { %12 = vsyncpa [#allocation6], 0 }
   0x2   :  { %13 = vsyncpa [#allocation4], 0  ;;  %s930_s21 = smov [#allocation2]   ;;  %s858_s25 = scalar_lea.hbm %s1130_s0, 256 }
   0x3   :  { %s19_s22 = sshll.u32 %s930_s21, 4  ;;  %p859_p0 = scmp.ne.s32.totalorder %s1130_s0, %s858_s25  ;;  %s20_s22 = int_to_ptr.vmem [resolvable:$true] %s19_s22 }
   0x4   :  { %p862_p1 = scmp.lt.u32.totalorder %s858_s25, %s1130_s0 }
   0x6   :  { %p864_p2 = pnand %p862_p1, %p859_p0 }
   0x8   :  { %867 = shalt.err (!%p864_p2)
}
   0x9   :  { %s868_s30 = scalar_lea.vmem %s20_s22, 256  ;;  %p873_p4 = scmp.lt.s32.totalorder %s20_s22, %s20_s22 }
   0xa   :  { %p869_p3 = scmp.ne.s32.totalorder %s20_s22, %s868_s30  ;;  %p874_p5 = scmp.lt.s32.totalorder %s868_s30, %s868_s30 }
   0xc   :  { %p875_p6 = por %p874_p5, %p873_p4 }
   0xe   :  { %p876_p7 = pnand %p875_p6, %p869_p3 }
  0x10   :  { %879 = shalt.err (!%p876_p7)
}
  0x11   :  { %s931_s7 = smov 128   ;;  %s932_s8 = smov 8  }
  0x12   :  { %25 = dma.hbm_to_vmem [thread:$0]  %s1130_s0, 256, %s20_s22, [#allocation3], %s931_s7, %s931_s7, %s932_s8  }
  0x13   :  { %s933_s11 = smov [#allocation5]   ;;  %s880_s15 = scalar_lea.hbm %s1134_s4, 256 }
  0x14   :  { %s37_s12 = sshll.u32 %s933_s11, 4  ;;  %p881_p8 = scmp.ne.s32.totalorder %s1134_s4, %s880_s15  ;;  %s38_s12 = int_to_ptr.vmem [resolvable:$true] %s37_s12 }
  0x15   :  { %p884_p9 = scmp.lt.u32.totalorder %s880_s15, %s1134_s4 }
  0x17   :  { %p886_p10 = pnand %p884_p9, %p881_p8 }
  0x19   :  { %889 = shalt.err (!%p886_p10)
}
  0x1a   :  { %s890_s20 = scalar_lea.vmem %s38_s12, 256  ;;  %p895_p12 = scmp.lt.s32.totalorder %s38_s12, %s38_s12 }
  0x1b   :  { %p891_p11 = scmp.ne.s32.totalorder %s38_s12, %s890_s20  ;;  %p896_p13 = scmp.lt.s32.totalorder %s890_s20, %s890_s20 }
  0x1d   :  { %p897_p0 = por %p896_p13, %p895_p12 }
  0x1f   :  { %p898_p1 = pnand %p897_p0, %p891_p11 }
  0x21   :  { %901 = shalt.err (!%p898_p1)
}
  0x22   :  { %s934_s0 = smov 64   ;;  %s935_s21 = smov 4  }
  0x23   :  { %43 = dma.hbm_to_vmem [thread:$0]  %s1134_s4, 256, %s38_s12, [#allocation6], %s934_s0, %s934_s0, %s935_s21  }
  0x24   :  { %924 = dma.done.wait [#allocation3], 256  }
  0x25   :  { %925 = vsyncadd [#allocation3], 4294967040 }
  0x26   :  { %926 = dma.done.wait [#allocation6], 256  }
  0x27   :  { %927 = vsyncadd [#allocation6], 4294967040  ;;  %vm57_vm0 = vcmask 261120   ;;  %v1008_v0 = vld [vmem:[#allocation2] sm:$0xff]  ;;  %v1010_v1 = vld [vmem:[#allocation2 + $0x8] sm:$0xff]  ;;  %v936_v15 = vmov 0.0  }
  0x28   :  { %v58_v2 = vsel %vm57_vm0, %v1008_v0, 0.0  ;;  %v61_v3 = vsel %vm57_vm0, %v1010_v1, 0.0  ;;  %v834_v14 = vld [vmem:[%s1133_s3] sm:$0xff]   ;;  %756 = vmatprep.subr.bf16.mxu0 %v936_v15  ;;  %764 = vmatprep.subr.bf16.mxu1 %v936_v15  ;;  %v835_v16 = vld [vmem:[%s1133_s3 + $0x8] sm:$0xff]   ;;  %vm937_vm1 = vmmov 0   ;;  %s940_s30 = smov 112  }
  0x29   :  { %59 = vadd.xlane.f32.xlu0 %v58_v2  ;;  %757 = vmatpush3.bf16.msra.mxu0 %v834_v14  ;;  %v717_v25 = vld [vmem:[%s1131_s1] ss:$0 sm:$0xff]  ;;  %s938_s1 = smov 80   ;;  %vm169_vm2 = vcmask 130048   ;;  %vm216_vm3 = vcmask 64512   ;;  %s941_s9 = smov 48  }
  0x2a   :  { %760 = vmatprep.mubr.msk.bf16.mxu0 %vm937_vm1, %v936_v15  ;;  %758 = vmatprep.subr.bf16.mxu0 %v936_v15  ;;  %v718_v29 = vld [vmem:[%s1132_s2] ss:$0 sm:$0xff]  ;;  %s939_s2 = smov 96   ;;  %vm234_vm4 = vcmask 1043456   ;;  %s942_s10 = smov 16  }
  0x2b   :  { %766 = vmatprep.mubr.msk.bf16.mxu1 %vm937_vm1, %v936_v15  ;;  %s943_s13 = smov [#allocation7]  }
  0x2c   :  { %s704_s14 = sshll.u32 %s943_s13, 4  ;;  %s705_s14 = int_to_ptr.vmem [resolvable:$true] %s704_s14 }
  0x2d   :  { %62 = vadd.xlane.f32.xlu0 %v61_v3  ;;  %759 = vmatpush3.bf16.msra.mxu0 %v835_v16  ;;  %s902_s15 = scalar_lea.vmem %s705_s14, 256  ;;  %p907_p3 = scmp.lt.s32.totalorder %s705_s14, %s705_s14 }
  0x2e   :  { %770 = vmatprep.subr.bf16.mxu0 %v936_v15  ;;  %p903_p2 = scmp.ne.s32.totalorder %s705_s14, %s902_s15  ;;  %p908_p4 = scmp.lt.s32.totalorder %s902_s15, %s902_s15 }
  0x30   :  { %p909_p5 = por %p908_p4, %p907_p3 }
  0x32   :  { %p910_p6 = pnand %p909_p5, %p903_p2 }
  0xb6   :  { %v60_v4 = vpop.xlane.xlu0 %59 }
  0xb7   :  { %v65_v5 = vmul.f32 0.03125, %v60_v4 }
  0xb9   :  { %v67_v6 = vsub.f32 %v1008_v0, %v65_v5 }
  0xba   :  { %v63_v7 = vpop.xlane.xlu0 %62 }
  0xbb   :  { %v66_v8 = vmul.f32 0.03125, %v63_v7  ;;  %v69_v9 = vmul.f32 %v67_v6, %v67_v6 }
  0xbd   :  { %v68_v10 = vsub.f32 %v1010_v1, %v66_v8  ;;  %v71_v11 = vsel %vm57_vm0, %v69_v9, 0.0 }
  0xbe   :  { %72 = vadd.xlane.f32.xlu1 %v71_v11 }
  0xbf   :  { %v70_v12 = vmul.f32 %v68_v10, %v68_v10 }
  0xc1   :  { %v74_v13 = vsel %vm57_vm0, %v70_v12, 0.0 }
  0xc2   :  { %75 = vadd.xlane.f32.xlu1 %v74_v13 }
 0x14b   :  { %v73_v17 = vpop.xlane.xlu1 %72 }
 0x14c   :  { %v77_v18 = vmul.f32 0.03125, %v73_v17 }
 0x14e   :  { %v79_v19 = vadd.f32 1e-05, %v77_v18 }
 0x14f   :  { %v76_v20 = vpop.xlane.xlu1 %75 }
 0x150   :  { %838 = vrsqrt.f32 %v79_v19  ;;  %v78_v21 = vmul.f32 0.03125, %v76_v20 }
 0x152   :  { %v80_v22 = vadd.f32 1e-05, %v78_v21 }
 0x154   :  { %840 = vrsqrt.f32 %v80_v22 }
 0x15a   :  { %v839_v23 = vpop.eup %838 }
 0x15b   :  { %v83_v24 = vmul.f32 %v839_v23, %v67_v6 }
 0x15d   :  { %v91_v28 = vmul.f32 %v717_v25, %v83_v24 }
 0x15e   :  { %v841_v26 = vpop.eup %840 }
 0x15f   :  { %v84_v27 = vmul.f32 %v841_v26, %v68_v10  ;;  %v99_v31 = vadd.f32 %v718_v29, %v91_v28 }
 0x161   :  { %v92_v30 = vmul.f32 %v717_v25, %v84_v27 }
 0x163   :  { %v100_v32 = vadd.f32 %v718_v29, %v92_v30 }
 0x165   :  { %v101_v33 = vpack.c.bf16 %v100_v32, %v99_v31 }
 0x167   :  { %761 = vmatmul.mubr.msk.bf16.vlgmr.msra.gmra.mrb[0].mxu0 %vm57_vm0, %v101_v33 }
 0x168   :  { %772 = vmatprep.mubr.msk.bf16.mxu0 %vm937_vm1, %v936_v15 }
 0x23a   :  { %v155_v34 = vpop.f32.mrb[0].mxu0 }
 0x23b   :  { %v762_v35 = vpop.f32.mrb[1].mxu0  ;;  %v162_v37 = vmul.f32 0.25, %v155_v34 }
 0x23c   :  { %v158_v36 = vpop.f32.mrb[2].mxu0 }
 0x23d   :  { %v163_v38 = vmul.f32 0.25, %v158_v36  ;;  %v1043_v39 = vpack.c.bf16 %v158_v36, %v155_v34  ;;  %v763_v40 = vpop.f32.mrb[3].mxu0 }
 0x23f   :  { %v164_v41 = vpack.c.bf16 %v163_v38, %v162_v37  ;;  %282 = vrot.lane.b32.xlu1 %v1043_v39, %s938_s1  ;;  %167 = vrot.lane.b32.xlu0 %v1043_v39, %s939_s2  ;;  %v1048_v42 = vrot.slane %v1043_v39, 4 }
 0x241   :  { %v397_v43 = vrot.slane %v164_v41, 4 }
 0x243   :  { %510 = vrot.lane.b32.xlu0 %v1048_v42, %s938_s1  ;;  %280 = vrot.lane.b32.xlu1 %v164_v41, %s940_s30 }
 0x247   :  { %399 = vrot.lane.b32.xlu1 %v1048_v42, %s939_s2 }
 0x24b   :  { %508 = vrot.lane.b32.xlu1 %v397_v43, %s940_s30 }
 0x2b1   :  { %v168_v44 = vpop.permute.xlu0 %167  ;;  %v283_v46 = vpop.permute.xlu1 %282 }
 0x2b2   :  { %v174_v45 = vsel %vm169_vm2, %v168_v44, 0  ;;  %v288_v48 = vsel %vm169_vm2, %v283_v46, 0 }
 0x2b3   :  { %765 = vmatpush3.bf16.xpose.msra.mxu1 %v174_v45 }
 0x2b4   :  { %776 = vmatprep.subr.bf16.mxu1 %v936_v15 }
 0x2b5   :  { %v281_v47 = vpop.permute.xlu1 %280  ;;  %v511_v51 = vpop.permute.xlu0 %510 }
 0x2b6   :  { %v516_v52 = vsel %vm169_vm2, %v511_v51, 0 }
 0x2b9   :  { %v400_v49 = vpop.permute.xlu1 %399 }
 0x2ba   :  { %767 = vmatmul.mubr.msk.bf16.vlgmr.msra.gmra.mrb[0].mxu1 %vm169_vm2, %v164_v41  ;;  %v405_v50 = vsel %vm169_vm2, %v400_v49, 0 }
 0x2bb   :  { %777 = vmatpush3.bf16.xpose.msra.mxu1 %v288_v48  ;;  %778 = vmatprep.mubr.msk.bf16.mxu1 %vm937_vm1, %v936_v15 }
 0x2bc   :  { %788 = vmatprep.subr.bf16.mxu1 %v936_v15 }
 0x2bd   :  { %v509_v53 = vpop.permute.xlu1 %508 }
 0x2c2   :  { %779 = vmatmul.mubr.msk.bf16.vlgmr.msra.gmra.mrb[4].mxu1 %vm169_vm2, %v281_v47 }
 0x2c3   :  { %789 = vmatpush3.bf16.xpose.msra.mxu1 %v405_v50  ;;  %790 = vmatprep.mubr.msk.bf16.mxu1 %vm937_vm1, %v936_v15 }
 0x2c4   :  { %800 = vmatprep.subr.bf16.mxu1 %v936_v15 }
 0x2ca   :  { %791 = vmatmul.mubr.msk.bf16.vlgmr.msra.gmra.mrb[8].mxu1 %vm169_vm2, %v397_v43 }
 0x2cb   :  { %801 = vmatpush3.bf16.xpose.msra.mxu1 %v516_v52  ;;  %802 = vmatprep.mubr.msk.bf16.mxu1 %vm937_vm1, %v936_v15 }
 0x2cc   :  { %812 = vmatprep.subr.bf16.mxu1 %v936_v15 }
 0x2d2   :  { %803 = vmatmul.mubr.msk.bf16.vlgmr.msra.gmra.mrb[12].mxu1 %vm169_vm2, %v509_v53 }
 0x2d3   :  { %816 = vmatprep.mubr.msk.bf16.mxu1 %vm937_vm1, %v936_v15 }
 0x38d   :  { %v210_v54 = vpop.f32.mrb[0].mxu1 }
 0x38e   :  { %v768_v55 = vpop.f32.mrb[1].mxu1  ;;  %v217_v56 = vsel %vm216_vm3, %v210_v54, -inf }
 0x38f   :  { %218 = vmax.xlane.f32.xlu0 %v217_v56  ;;  %v213_v57 = vpop.f32.mrb[2].mxu1 }
 0x390   :  { %v769_v58 = vpop.f32.mrb[3].mxu1  ;;  %v836_v57 = vld [vmem:[#allocation5] sm:$0xff]  }
 0x391   :  { %813 = vmatpush3.bf16.msra.mxu1 %v836_v57 }
 0x392   :  { %814 = vmatprep.subr.bf16.mxu1 %v936_v15 }
 0x395   :  { %v324_v59 = vpop.f32.mrb[4].mxu1 }
 0x396   :  { %v780_v60 = vpop.f32.mrb[5].mxu1  ;;  %v330_v61 = vsel %vm216_vm3, %v324_v59, -inf }
 0x397   :  { %331 = vmax.xlane.f32.xlu1 %v330_v61  ;;  %v327_v62 = vpop.f32.mrb[6].mxu1 }
 0x398   :  { %v781_v63 = vpop.f32.mrb[7].mxu1 }
 0x39d   :  { %v441_v2 = vpop.f32.mrb[8].mxu1 }
 0x39e   :  { %v792_v3 = vpop.f32.mrb[9].mxu1  ;;  %v447_v4 = vsel %vm216_vm3, %v441_v2, -inf }
 0x39f   :  { %448 = vmax.xlane.f32.xlu0 %v447_v4  ;;  %v444_v5 = vpop.f32.mrb[10].mxu1 }
 0x3a0   :  { %v793_v6 = vpop.f32.mrb[11].mxu1 }
 0x3a5   :  { %v552_v7 = vpop.f32.mrb[12].mxu1 }
 0x3a6   :  { %v804_v8 = vpop.f32.mrb[13].mxu1  ;;  %v558_v9 = vsel %vm216_vm3, %v552_v7, -inf }
 0x3a7   :  { %559 = vmax.xlane.f32.xlu0 %v558_v9  ;;  %v555_v10 = vpop.f32.mrb[14].mxu1  ;;  %v837_v9 = vld [vmem:[#allocation5 + $0x8] sm:$0xff]  }
 0x3a8   :  { %v805_v11 = vpop.f32.mrb[15].mxu1  ;;  %815 = vmatpush3.bf16.msra.mxu1 %v837_v9 }
 0x41c   :  { %v219_v12 = vpop.xlane.xlu0 %218 }
 0x41d   :  { %v220_v13 = vsub.f32 %v210_v54, %v219_v12 }
 0x41f   :  { %v221_v14 = vmul.f32 1.442695, %v220_v13 }
 0x421   :  { %842 = vpow2.f32 %v221_v14 }
 0x424   :  { %v332_v16 = vpop.xlane.xlu1 %331 }
 0x425   :  { %v333_v17 = vsub.f32 %v324_v59, %v332_v16 }
 0x427   :  { %v334_v18 = vmul.f32 1.442695, %v333_v17 }
 0x429   :  { %844 = vpow2.f32 %v334_v18 }
 0x42b   :  { %v843_v19 = vpop.eup %842 }
 0x42c   :  { %v449_v20 = vpop.xlane.xlu0 %448  ;;  %v223_v21 = vsel %vm216_vm3, %v843_v19, 0.0 }
 0x42d   :  { %v450_v22 = vsub.f32 %v441_v2, %v449_v20  ;;  %224 = vadd.xlane.f32.xlu0 %v223_v21 }
 0x42f   :  { %v451_v23 = vmul.f32 1.442695, %v450_v22 }
 0x431   :  { %846 = vpow2.f32 %v451_v23  ;;  %v730_v23 = vld [vmem:[%s1135_s5] ss:$0 sm:$0xff] }
 0x433   :  { %v845_v24 = vpop.eup %844 }
 0x434   :  { %v336_v25 = vsel %vm216_vm3, %v845_v24, 0.0  ;;  %v560_v28 = vpop.xlane.xlu0 %559 }
 0x435   :  { %337 = vadd.xlane.f32.xlu1 %v336_v25  ;;  %v561_v29 = vsub.f32 %v552_v7, %v560_v28 }
 0x437   :  { %v562_v30 = vmul.f32 1.442695, %v561_v29 }
 0x439   :  { %848 = vpow2.f32 %v562_v30 }
 0x43b   :  { %v847_v26 = vpop.eup %846 }
 0x43c   :  { %v453_v27 = vsel %vm216_vm3, %v847_v26, 0.0 }
 0x43d   :  { %454 = vadd.xlane.f32.xlu0 %v453_v27 }
 0x443   :  { %v849_v31 = vpop.eup %848 }
 0x444   :  { %v564_v32 = vsel %vm216_vm3, %v849_v31, 0.0 }
 0x446   :  { %342 = vrot.lane.b32.xlu1 %v1043_v39, %s941_s9 }
 0x44a   :  { %459 = vrot.lane.b32.xlu1 %v1048_v42, %s934_s0 }
 0x453   :  { %229 = vrot.lane.b32.xlu0 %v1043_v39, %s934_s0 }
 0x46e   :  { %565 = vadd.xlane.f32.xlu1 %v564_v32 }
 0x47f   :  { %570 = vrot.lane.b32.xlu1 %v1048_v42, %s941_s9 }
 0x4ba   :  { %v225_v33 = vpop.xlane.xlu0 %224 }
 0x4bb   :  { %850 = vrcp.f32 %v225_v33 }
 0x4c2   :  { %v338_v34 = vpop.xlane.xlu1 %337 }
 0x4c3   :  { %852 = vrcp.f32 %v338_v34 }
 0x4c5   :  { %v851_v35 = vpop.eup %850 }
 0x4c6   :  { %v227_v37 = vmul.f32 %v851_v35, %v843_v19  ;;  %v343_v40 = vpop.permute.xlu1 %342 }
 0x4c7   :  { %v348_v42 = vsel %vm234_vm4, %v343_v40, 0 }
 0x4c8   :  { %v228_v41 = vpack.c.bf16 %v227_v37, %v227_v37 }
 0x4ca   :  { %v455_v36 = vpop.xlane.xlu0 %454  ;;  %v460_v45 = vpop.permute.xlu1 %459 }
 0x4cb   :  { %854 = vrcp.f32 %v455_v36  ;;  %v465_v48 = vsel %vm234_vm4, %v460_v45, 0 }
 0x4cd   :  { %v853_v43 = vpop.eup %852 }
 0x4ce   :  { %v230_v38 = vpop.permute.xlu0 %229  ;;  %v340_v44 = vmul.f32 %v853_v43, %v845_v24 }
 0x4cf   :  { %v236_v39 = vsel %vm234_vm4, %v230_v38, 0 }
 0x4d0   :  { %771 = vmatpush3.bf16.msra.mxu0 %v236_v39  ;;  %v341_v46 = vpack.c.bf16 %v340_v44, %v340_v44 }
 0x4d1   :  { %782 = vmatprep.subr.bf16.mxu0 %v936_v15 }
 0x4d3   :  { %773 = vmatmul.mubr.msk.bf16.vlgmr.msra.gmra.mrb[4].mxu0 %vm216_vm3, %v228_v41 }
 0x4d4   :  { %783 = vmatpush3.bf16.msra.mxu0 %v348_v42  ;;  %784 = vmatprep.mubr.msk.bf16.mxu0 %vm937_vm1, %v936_v15 }
 0x4d5   :  { %794 = vmatprep.subr.bf16.mxu0 %v936_v15  ;;  %v855_v47 = vpop.eup %854 }
 0x4d6   :  { %v457_v49 = vmul.f32 %v855_v47, %v847_v26 }
 0x4d8   :  { %v458_v50 = vpack.c.bf16 %v457_v49, %v457_v49 }
 0x4db   :  { %785 = vmatmul.mubr.msk.bf16.vlgmr.msra.gmra.mrb[8].mxu0 %vm216_vm3, %v341_v46 }
 0x4dc   :  { %795 = vmatpush3.bf16.msra.mxu0 %v465_v48  ;;  %796 = vmatprep.mubr.msk.bf16.mxu0 %vm937_vm1, %v936_v15 }
 0x4dd   :  { %806 = vmatprep.subr.bf16.mxu0 %v936_v15 }
 0x4e3   :  { %797 = vmatmul.mubr.msk.bf16.vlgmr.msra.gmra.mrb[12].mxu0 %vm216_vm3, %v458_v50 }
 0x4e4   :  { %808 = vmatprep.mubr.msk.bf16.mxu0 %vm937_vm1, %v936_v15 }
 0x4fb   :  { %v566_v51 = vpop.xlane.xlu1 %565 }
 0x4fc   :  { %856 = vrcp.f32 %v566_v51 }
 0x4ff   :  { %v571_v52 = vpop.permute.xlu1 %570 }
 0x500   :  { %v576_v53 = vsel %vm234_vm4, %v571_v52, 0 }
 0x501   :  { %807 = vmatpush3.bf16.msra.mxu0 %v576_v53 }
 0x506   :  { %v857_v54 = vpop.eup %856 }
 0x507   :  { %v568_v55 = vmul.f32 %v857_v54, %v849_v31 }
 0x509   :  { %v569_v56 = vpack.c.bf16 %v568_v55, %v568_v55 }
 0x50b   :  { %809 = vmatmul.mubr.msk.bf16.vlgmr.msra.gmra.mrb[16].mxu0 %vm216_vm3, %v569_v56 }
 0x5a6   :  { %v272_v58 = vpop.f32.mrb[4].mxu0 }
 0x5a7   :  { %v774_v59 = vpop.f32.mrb[5].mxu0  ;;  %v278_v18 = vpack.c.bf16 %v272_v58, %v272_v58 }
 0x5a8   :  { %v275_v60 = vpop.f32.mrb[6].mxu0 }
 0x5a9   :  { %v775_v61 = vpop.f32.mrb[7].mxu0 }
 0x5ae   :  { %v384_v62 = vpop.f32.mrb[8].mxu0 }
 0x5af   :  { %v390_v63 = vpack.c.bf16 %v384_v62, %v384_v62  ;;  %v786_v2 = vpop.f32.mrb[9].mxu0 }
 0x5b0   :  { %v387_v3 = vpop.f32.mrb[10].mxu0 }
 0x5b1   :  { %392 = vrot.lane.b32.xlu1 %v390_v63, %s942_s10  ;;  %v787_v4 = vpop.f32.mrb[11].mxu0 }
 0x5b6   :  { %v501_v5 = vpop.f32.mrb[12].mxu0 }
 0x5b7   :  { %v798_v6 = vpop.f32.mrb[13].mxu0  ;;  %v507_v14 = vpack.c.bf16 %v501_v5, %v501_v5 }
 0x5b8   :  { %v504_v7 = vpop.f32.mrb[14].mxu0 }
 0x5b9   :  { %v799_v8 = vpop.f32.mrb[15].mxu0 }
 0x5de   :  { %v612_v10 = vpop.f32.mrb[16].mxu0 }
 0x5df   :  { %v618_v11 = vpack.c.bf16 %v612_v10, %v612_v10  ;;  %v810_v12 = vpop.f32.mrb[17].mxu0 }
 0x5e0   :  { %v615_v13 = vpop.f32.mrb[18].mxu0 }
 0x5e1   :  { %620 = vrot.lane.b32.xlu0 %v618_v11, %s942_s10  ;;  %v811_v15 = vpop.f32.mrb[19].mxu0 }
 0x623   :  { %v393_v16 = vpop.permute.xlu1 %392 }
 0x624   :  { %v396_v21 = vsel %vm169_vm2, %v278_v18, %v393_v16 }
 0x653   :  { %v621_v17 = vpop.permute.xlu0 %620 }
 0x654   :  { %v624_v19 = vsel %vm169_vm2, %v507_v14, %v621_v17 }
 0x655   :  { %v626_v20 = vrot.slane %v624_v19, 4 }
 0x657   :  { %v628_v22 = vsel %vm234_vm4, %v396_v21, %v626_v20 }
 0x658   :  { %817 = vmatmul.mubr.msk.bf16.vlgmr.msra.gmra.mrb[16].mxu1 %vm57_vm0, %v628_v22 }
 0x72b   :  { %v688_v24 = vpop.f32.mrb[16].mxu1 }
 0x72c   :  { %v689_v25 = vadd.f32 %v730_v23, %v688_v24  ;;  %v818_v26 = vpop.f32.mrb[17].mxu1 }
 0x72d   :  { %v691_v27 = vpop.f32.mrb[18].mxu1 }
 0x72e   :  { %v695_v28 = vadd.f32 %v689_v25, %v1008_v0  ;;  %v692_v29 = vadd.f32 %v730_v23, %v691_v27  ;;  %v819_v30 = vpop.f32.mrb[19].mxu1 }
 0x730   :  { %697 = vst.msk [vmem:[#allocation7] sm:$0xff] %vm57_vm0, %v695_v28  ;;  %v696_v31 = vadd.f32 %v692_v29, %v1010_v1 }
 0x732   :  { %698 = vst.msk [vmem:[#allocation7 + $0x8] sm:$0xff] %vm57_vm0, %v696_v31 }
 0x733   :  { %913 = shalt.err (!%p910_p6)
}
 0x734   :  { %s914_s17 = scalar_lea.hbm %s1136_s6, 256 }
 0x735   :  { %p915_p7 = scmp.ne.s32.totalorder %s1136_s6, %s914_s17  ;;  %p918_p8 = scmp.lt.u32.totalorder %s914_s17, %s1136_s6 }
 0x737   :  { %p920_p9 = pnand %p918_p8, %p915_p7 }
 0x739   :  { %923 = shalt.err (!%p920_p9)
}
 0x73a   :  { %710 = dma.vmem_to_hbm [thread:$0]  %s705_s14, 256, %s1136_s6, [#allocation4], %s931_s7, %s931_s7, %s932_s8  }
 0x73b   :  { %928 = dma.done.wait [#allocation4], 256  }
 0x73c   :  { %929 = vsyncadd [#allocation4], 4294967040 }
 0x73d   :  { %714 = vsyncpa [#allocation3], 1 }
 0x73e   :  { %715 = vsyncpa [#allocation6], 1 }
 0x73f   :  { %716 = vsyncpa [#allocation4], 1 }

// kernel: multi_stream_attention.3
= control target key start
LH: loop header
LB: loop body
LE: loop exit
PB: predicated region body
PF: predicated region fallthrough
CT: control target
= control target key end

     0   :  { %vm29_vm0 = vcmask 261120   ;;  %s1024_s0 = inlined_call_operand.vmem [shape: f32[2,8,32], index: 0, kind: input, shape index: {}]   ;;  %s1025_s1 = inlined_call_operand.vmem [shape: f32[1,32], index: 1, kind: input, shape index: {}]   ;;  %s1026_s2 = inlined_call_operand.vmem [shape: f32[1,32], index: 2, kind: input, shape index: {}]   ;;  %s1027_s3 = inlined_call_operand.vmem [shape: bf16[32,96], index: 3, kind: input, shape index: {}]   ;;  %s1028_s4 = inlined_call_operand.vmem [shape: bf16[32,32], index: 4, kind: input, shape index: {}]   ;;  %s1029_s5 = inlined_call_operand.vmem [shape: f32[1,32], index: 5, kind: input, shape index: {}]   ;;  %s1030_s6 = inlined_call_operand.hbm [shape: f32[2,8,32], index: 6, kind: output, shape index: {}]  }
   0x1   :  { %v898_v0 = vld [vmem:[%s1024_s0] sm:$0xff]  ;;  %v903_v1 = vld [vmem:[%s1024_s0 + $0x8] sm:$0xff] }
   0x2   :  { %v30_v2 = vsel %vm29_vm0, %v898_v0, 0.0  ;;  %v33_v3 = vsel %vm29_vm0, %v903_v1, 0.0 }
   0x3   :  { %31 = vadd.xlane.f32.xlu0 %v30_v2 }
   0x4   :  { %11 = vsyncpa [#allocation3], 0  ;;  %v801_v14 = vld [vmem:[%s1027_s3] sm:$0xff]   ;;  %v849_v15 = vmov 0.0   ;;  %v802_v16 = vld [vmem:[%s1027_s3 + $0x8] sm:$0xff]   ;;  %vm850_vm1 = vmmov 0  }
   0x5   :  { %726 = vmatprep.subr.bf16.mxu0 %v849_v15  ;;  %734 = vmatprep.subr.bf16.mxu1 %v849_v15  ;;  %v687_v25 = vld [vmem:[%s1025_s1] ss:$0 sm:$0xff]  ;;  %s851_s1 = smov 80   ;;  %s853_s7 = smov 112   ;;  %vm141_vm2 = vcmask 130048   ;;  %vm188_vm3 = vcmask 64512  }
   0x6   :  { %727 = vmatpush3.bf16.msra.mxu0 %v801_v14  ;;  %730 = vmatprep.mubr.msk.bf16.mxu0 %vm850_vm1, %v849_v15  ;;  %v688_v29 = vld [vmem:[%s1026_s2] ss:$0 sm:$0xff]  ;;  %s852_s2 = smov 96   ;;  %s854_s8 = smov 48   ;;  %vm206_vm4 = vcmask 1043456  }
   0x7   :  { %34 = vadd.xlane.f32.xlu0 %v33_v3  ;;  %728 = vmatprep.subr.bf16.mxu0 %v849_v15  ;;  %s855_s9 = smov 64   ;;  %s856_s12 = smov 16  }
   0x8   :  { %736 = vmatprep.mubr.msk.bf16.mxu1 %vm850_vm1, %v849_v15  ;;  %s857_s16 = smov [#allocation2]  }
   0x9   :  { %s676_s17 = sshll.u32 %s857_s16, 4  ;;  %s677_s17 = int_to_ptr.vmem [resolvable:$true] %s676_s17 }
   0xa   :  { %729 = vmatpush3.bf16.msra.mxu0 %v802_v16  ;;  %s825_s18 = scalar_lea.vmem %s677_s17, 256  ;;  %p830_p1 = scmp.lt.s32.totalorder %s677_s17, %s677_s17 }
   0xb   :  { %740 = vmatprep.subr.bf16.mxu0 %v849_v15  ;;  %p826_p0 = scmp.ne.s32.totalorder %s677_s17, %s825_s18  ;;  %p831_p2 = scmp.lt.s32.totalorder %s825_s18, %s825_s18 }
   0xd   :  { %p832_p3 = por %p831_p2, %p830_p1 }
   0xf   :  { %p833_p4 = pnand %p832_p3, %p826_p0 }
  0x90   :  { %v32_v4 = vpop.xlane.xlu0 %31 }
  0x91   :  { %v37_v5 = vmul.f32 0.03125, %v32_v4 }
  0x93   :  { %v39_v6 = vsub.f32 %v898_v0, %v37_v5 }
  0x94   :  { %v35_v7 = vpop.xlane.xlu0 %34 }
  0x95   :  { %v38_v8 = vmul.f32 0.03125, %v35_v7  ;;  %v41_v9 = vmul.f32 %v39_v6, %v39_v6 }
  0x97   :  { %v40_v10 = vsub.f32 %v903_v1, %v38_v8  ;;  %v43_v11 = vsel %vm29_vm0, %v41_v9, 0.0 }
  0x98   :  { %44 = vadd.xlane.f32.xlu1 %v43_v11 }
  0x99   :  { %v42_v12 = vmul.f32 %v40_v10, %v40_v10 }
  0x9b   :  { %v46_v13 = vsel %vm29_vm0, %v42_v12, 0.0 }
  0x9c   :  { %47 = vadd.xlane.f32.xlu1 %v46_v13 }
 0x125   :  { %v45_v17 = vpop.xlane.xlu1 %44 }
 0x126   :  { %v49_v18 = vmul.f32 0.03125, %v45_v17 }
 0x128   :  { %v51_v19 = vadd.f32 1e-05, %v49_v18 }
 0x129   :  { %v48_v20 = vpop.xlane.xlu1 %47 }
 0x12a   :  { %805 = vrsqrt.f32 %v51_v19  ;;  %v50_v21 = vmul.f32 0.03125, %v48_v20 }
 0x12c   :  { %v52_v22 = vadd.f32 1e-05, %v50_v21 }
 0x12e   :  { %807 = vrsqrt.f32 %v52_v22 }
 0x134   :  { %v806_v23 = vpop.eup %805 }
 0x135   :  { %v55_v24 = vmul.f32 %v806_v23, %v39_v6 }
 0x137   :  { %v63_v28 = vmul.f32 %v687_v25, %v55_v24 }
 0x138   :  { %v808_v26 = vpop.eup %807 }
 0x139   :  { %v56_v27 = vmul.f32 %v808_v26, %v40_v10  ;;  %v71_v31 = vadd.f32 %v688_v29, %v63_v28 }
 0x13b   :  { %v64_v30 = vmul.f32 %v687_v25, %v56_v27 }
 0x13d   :  { %v72_v32 = vadd.f32 %v688_v29, %v64_v30 }
 0x13f   :  { %v73_v33 = vpack.c.bf16 %v72_v32, %v71_v31 }
 0x141   :  { %731 = vmatmul.mubr.msk.bf16.vlgmr.msra.gmra.mrb[0].mxu0 %vm29_vm0, %v73_v33 }
 0x142   :  { %742 = vmatprep.mubr.msk.bf16.mxu0 %vm850_vm1, %v849_v15 }
 0x214   :  { %v127_v34 = vpop.f32.mrb[0].mxu0 }
 0x215   :  { %v732_v35 = vpop.f32.mrb[1].mxu0  ;;  %v134_v37 = vmul.f32 0.25, %v127_v34 }
 0x216   :  { %v130_v36 = vpop.f32.mrb[2].mxu0 }
 0x217   :  { %v135_v38 = vmul.f32 0.25, %v130_v36  ;;  %v936_v39 = vpack.c.bf16 %v130_v36, %v127_v34  ;;  %v733_v40 = vpop.f32.mrb[3].mxu0 }
 0x219   :  { %v136_v41 = vpack.c.bf16 %v135_v38, %v134_v37  ;;  %254 = vrot.lane.b32.xlu1 %v936_v39, %s851_s1  ;;  %139 = vrot.lane.b32.xlu0 %v936_v39, %s852_s2  ;;  %v941_v42 = vrot.slane %v936_v39, 4 }
 0x21b   :  { %v369_v43 = vrot.slane %v136_v41, 4 }
 0x21d   :  { %482 = vrot.lane.b32.xlu0 %v941_v42, %s851_s1  ;;  %252 = vrot.lane.b32.xlu1 %v136_v41, %s853_s7 }
 0x221   :  { %371 = vrot.lane.b32.xlu1 %v941_v42, %s852_s2 }
 0x225   :  { %480 = vrot.lane.b32.xlu1 %v369_v43, %s853_s7 }
 0x28b   :  { %v140_v44 = vpop.permute.xlu0 %139  ;;  %v255_v46 = vpop.permute.xlu1 %254 }
 0x28c   :  { %v146_v45 = vsel %vm141_vm2, %v140_v44, 0  ;;  %v260_v48 = vsel %vm141_vm2, %v255_v46, 0 }
 0x28d   :  { %735 = vmatpush3.bf16.xpose.msra.mxu1 %v146_v45 }
 0x28e   :  { %746 = vmatprep.subr.bf16.mxu1 %v849_v15 }
 0x28f   :  { %v253_v47 = vpop.permute.xlu1 %252  ;;  %v483_v51 = vpop.permute.xlu0 %482 }
 0x290   :  { %v488_v52 = vsel %vm141_vm2, %v483_v51, 0 }
 0x293   :  { %v372_v49 = vpop.permute.xlu1 %371 }
 0x294   :  { %737 = vmatmul.mubr.msk.bf16.vlgmr.msra.gmra.mrb[0].mxu1 %vm141_vm2, %v136_v41  ;;  %v377_v50 = vsel %vm141_vm2, %v372_v49, 0 }
 0x295   :  { %747 = vmatpush3.bf16.xpose.msra.mxu1 %v260_v48  ;;  %748 = vmatprep.mubr.msk.bf16.mxu1 %vm850_vm1, %v849_v15 }
 0x296   :  { %758 = vmatprep.subr.bf16.mxu1 %v849_v15 }
 0x297   :  { %v481_v53 = vpop.permute.xlu1 %480 }
 0x29c   :  { %749 = vmatmul.mubr.msk.bf16.vlgmr.msra.gmra.mrb[4].mxu1 %vm141_vm2, %v253_v47 }
 0x29d   :  { %759 = vmatpush3.bf16.xpose.msra.mxu1 %v377_v50  ;;  %760 = vmatprep.mubr.msk.bf16.mxu1 %vm850_vm1, %v849_v15 }
 0x29e   :  { %770 = vmatprep.subr.bf16.mxu1 %v849_v15 }
 0x2a4   :  { %761 = vmatmul.mubr.msk.bf16.vlgmr.msra.gmra.mrb[8].mxu1 %vm141_vm2, %v369_v43 }
 0x2a5   :  { %771 = vmatpush3.bf16.xpose.msra.mxu1 %v488_v52  ;;  %772 = vmatprep.mubr.msk.bf16.mxu1 %vm850_vm1, %v849_v15 }
 0x2a6   :  { %782 = vmatprep.subr.bf16.mxu1 %v849_v15 }
 0x2ac   :  { %773 = vmatmul.mubr.msk.bf16.vlgmr.msra.gmra.mrb[12].mxu1 %vm141_vm2, %v481_v53 }
 0x2ad   :  { %786 = vmatprep.mubr.msk.bf16.mxu1 %vm850_vm1, %v849_v15 }
 0x367   :  { %v182_v54 = vpop.f32.mrb[0].mxu1 }
 0x368   :  { %v738_v55 = vpop.f32.mrb[1].mxu1  ;;  %v189_v56 = vsel %vm188_vm3, %v182_v54, -inf }
 0x369   :  { %190 = vmax.xlane.f32.xlu0 %v189_v56  ;;  %v185_v57 = vpop.f32.mrb[2].mxu1 }
 0x36a   :  { %v739_v58 = vpop.f32.mrb[3].mxu1  ;;  %v803_v57 = vld [vmem:[%s1028_s4] sm:$0xff]  }
 0x36b   :  { %783 = vmatpush3.bf16.msra.mxu1 %v803_v57 }
 0x36c   :  { %784 = vmatprep.subr.bf16.mxu1 %v849_v15 }
 0x36f   :  { %v296_v59 = vpop.f32.mrb[4].mxu1 }
 0x370   :  { %v750_v60 = vpop.f32.mrb[5].mxu1  ;;  %v302_v61 = vsel %vm188_vm3, %v296_v59, -inf }
 0x371   :  { %303 = vmax.xlane.f32.xlu1 %v302_v61  ;;  %v299_v62 = vpop.f32.mrb[6].mxu1 }
 0x372   :  { %v751_v63 = vpop.f32.mrb[7].mxu1 }
 0x377   :  { %v413_v2 = vpop.f32.mrb[8].mxu1 }
 0x378   :  { %v762_v3 = vpop.f32.mrb[9].mxu1  ;;  %v419_v4 = vsel %vm188_vm3, %v413_v2, -inf }
 0x379   :  { %420 = vmax.xlane.f32.xlu0 %v419_v4  ;;  %v416_v5 = vpop.f32.mrb[10].mxu1 }
 0x37a   :  { %v763_v6 = vpop.f32.mrb[11].mxu1 }
 0x37f   :  { %v524_v7 = vpop.f32.mrb[12].mxu1 }
 0x380   :  { %v774_v8 = vpop.f32.mrb[13].mxu1  ;;  %v530_v9 = vsel %vm188_vm3, %v524_v7, -inf }
 0x381   :  { %531 = vmax.xlane.f32.xlu0 %v530_v9  ;;  %v527_v10 = vpop.f32.mrb[14].mxu1  ;;  %v804_v9 = vld [vmem:[%s1028_s4 + $0x8] sm:$0xff]  }
 0x382   :  { %v775_v11 = vpop.f32.mrb[15].mxu1  ;;  %785 = vmatpush3.bf16.msra.mxu1 %v804_v9 }
 0x3f6   :  { %v191_v12 = vpop.xlane.xlu0 %190 }
 0x3f7   :  { %v192_v13 = vsub.f32 %v182_v54, %v191_v12 }
 0x3f9   :  { %v193_v14 = vmul.f32 1.442695, %v192_v13 }
 0x3fb   :  { %809 = vpow2.f32 %v193_v14 }
 0x3fe   :  { %v304_v16 = vpop.xlane.xlu1 %303 }
 0x3ff   :  { %v305_v17 = vsub.f32 %v296_v59, %v304_v16 }
 0x401   :  { %v306_v18 = vmul.f32 1.442695, %v305_v17 }
 0x403   :  { %811 = vpow2.f32 %v306_v18 }
 0x405   :  { %v810_v19 = vpop.eup %809 }
 0x406   :  { %v421_v20 = vpop.xlane.xlu0 %420  ;;  %v195_v21 = vsel %vm188_vm3, %v810_v19, 0.0 }
 0x407   :  { %v422_v22 = vsub.f32 %v413_v2, %v421_v20  ;;  %196 = vadd.xlane.f32.xlu0 %v195_v21 }
 0x409   :  { %v423_v23 = vmul.f32 1.442695, %v422_v22 }
 0x40b   :  { %813 = vpow2.f32 %v423_v23  ;;  %v700_v23 = vld [vmem:[%s1029_s5] ss:$0 sm:$0xff] }
 0x40d   :  { %v812_v24 = vpop.eup %811 }
 0x40e   :  { %v308_v25 = vsel %vm188_vm3, %v812_v24, 0.0  ;;  %v532_v28 = vpop.xlane.xlu0 %531 }
 0x40f   :  { %309 = vadd.xlane.f32.xlu1 %v308_v25  ;;  %v533_v29 = vsub.f32 %v524_v7, %v532_v28 }
 0x411   :  { %v534_v30 = vmul.f32 1.442695, %v533_v29 }
 0x413   :  { %815 = vpow2.f32 %v534_v30 }
 0x415   :  { %v814_v26 = vpop.eup %813 }
 0x416   :  { %v425_v27 = vsel %vm188_vm3, %v814_v26, 0.0 }
 0x417   :  { %426 = vadd.xlane.f32.xlu0 %v425_v27 }
 0x41d   :  { %v816_v31 = vpop.eup %815 }
 0x41e   :  { %v536_v32 = vsel %vm188_vm3, %v816_v31, 0.0 }
 0x420   :  { %314 = vrot.lane.b32.xlu1 %v936_v39, %s854_s8 }
 0x424   :  { %431 = vrot.lane.b32.xlu1 %v941_v42, %s855_s9 }
 0x42d   :  { %201 = vrot.lane.b32.xlu0 %v936_v39, %s855_s9 }
 0x448   :  { %537 = vadd.xlane.f32.xlu1 %v536_v32 }
 0x459   :  { %542 = vrot.lane.b32.xlu1 %v941_v42, %s854_s8 }
 0x494   :  { %v197_v33 = vpop.xlane.xlu0 %196 }
 0x495   :  { %817 = vrcp.f32 %v197_v33 }
 0x49c   :  { %v310_v34 = vpop.xlane.xlu1 %309 }
 0x49d   :  { %819 = vrcp.f32 %v310_v34 }
 0x49f   :  { %v818_v35 = vpop.eup %817 }
 0x4a0   :  { %v199_v37 = vmul.f32 %v818_v35, %v810_v19  ;;  %v315_v40 = vpop.permute.xlu1 %314 }
 0x4a1   :  { %v320_v42 = vsel %vm206_vm4, %v315_v40, 0 }
 0x4a2   :  { %v200_v41 = vpack.c.bf16 %v199_v37, %v199_v37 }
 0x4a4   :  { %v427_v36 = vpop.xlane.xlu0 %426  ;;  %v432_v45 = vpop.permute.xlu1 %431 }
 0x4a5   :  { %821 = vrcp.f32 %v427_v36  ;;  %v437_v48 = vsel %vm206_vm4, %v432_v45, 0 }
 0x4a7   :  { %v820_v43 = vpop.eup %819 }
 0x4a8   :  { %v202_v38 = vpop.permute.xlu0 %201  ;;  %v312_v44 = vmul.f32 %v820_v43, %v812_v24 }
 0x4a9   :  { %v208_v39 = vsel %vm206_vm4, %v202_v38, 0 }
 0x4aa   :  { %741 = vmatpush3.bf16.msra.mxu0 %v208_v39  ;;  %v313_v46 = vpack.c.bf16 %v312_v44, %v312_v44 }
 0x4ab   :  { %752 = vmatprep.subr.bf16.mxu0 %v849_v15 }
 0x4ad   :  { %743 = vmatmul.mubr.msk.bf16.vlgmr.msra.gmra.mrb[4].mxu0 %vm188_vm3, %v200_v41 }
 0x4ae   :  { %753 = vmatpush3.bf16.msra.mxu0 %v320_v42  ;;  %754 = vmatprep.mubr.msk.bf16.mxu0 %vm850_vm1, %v849_v15 }
 0x4af   :  { %764 = vmatprep.subr.bf16.mxu0 %v849_v15  ;;  %v822_v47 = vpop.eup %821 }
 0x4b0   :  { %v429_v49 = vmul.f32 %v822_v47, %v814_v26 }
 0x4b2   :  { %v430_v50 = vpack.c.bf16 %v429_v49, %v429_v49 }
 0x4b5   :  { %755 = vmatmul.mubr.msk.bf16.vlgmr.msra.gmra.mrb[8].mxu0 %vm188_vm3, %v313_v46 }
 0x4b6   :  { %765 = vmatpush3.bf16.msra.mxu0 %v437_v48  ;;  %766 = vmatprep.mubr.msk.bf16.mxu0 %vm850_vm1, %v849_v15 }
 0x4b7   :  { %776 = vmatprep.subr.bf16.mxu0 %v849_v15 }
 0x4bd   :  { %767 = vmatmul.mubr.msk.bf16.vlgmr.msra.gmra.mrb[12].mxu0 %vm188_vm3, %v430_v50 }
 0x4be   :  { %778 = vmatprep.mubr.msk.bf16.mxu0 %vm850_vm1, %v849_v15 }
 0x4d5   :  { %v538_v51 = vpop.xlane.xlu1 %537 }
 0x4d6   :  { %823 = vrcp.f32 %v538_v51 }
 0x4d9   :  { %v543_v52 = vpop.permute.xlu1 %542 }
 0x4da   :  { %v548_v53 = vsel %vm206_vm4, %v543_v52, 0 }
 0x4db   :  { %777 = vmatpush3.bf16.msra.mxu0 %v548_v53 }
 0x4e0   :  { %v824_v54 = vpop.eup %823 }
 0x4e1   :  { %v540_v55 = vmul.f32 %v824_v54, %v816_v31 }
 0x4e3   :  { %v541_v56 = vpack.c.bf16 %v540_v55, %v540_v55 }
 0x4e5   :  { %779 = vmatmul.mubr.msk.bf16.vlgmr.msra.gmra.mrb[16].mxu0 %vm188_vm3, %v541_v56 }
 0x580   :  { %v244_v58 = vpop.f32.mrb[4].mxu0 }
 0x581   :  { %v744_v59 = vpop.f32.mrb[5].mxu0  ;;  %v250_v18 = vpack.c.bf16 %v244_v58, %v244_v58 }
 0x582   :  { %v247_v60 = vpop.f32.mrb[6].mxu0 }
 0x583   :  { %v745_v61 = vpop.f32.mrb[7].mxu0 }
 0x588   :  { %v356_v62 = vpop.f32.mrb[8].mxu0 }
 0x589   :  { %v362_v63 = vpack.c.bf16 %v356_v62, %v356_v62  ;;  %v756_v2 = vpop.f32.mrb[9].mxu0 }
 0x58a   :  { %v359_v3 = vpop.f32.mrb[10].mxu0 }
 0x58b   :  { %364 = vrot.lane.b32.xlu1 %v362_v63, %s856_s12  ;;  %v757_v4 = vpop.f32.mrb[11].mxu0 }
 0x590   :  { %v473_v5 = vpop.f32.mrb[12].mxu0 }
 0x591   :  { %v768_v6 = vpop.f32.mrb[13].mxu0  ;;  %v479_v14 = vpack.c.bf16 %v473_v5, %v473_v5 }
 0x592   :  { %v476_v7 = vpop.f32.mrb[14].mxu0 }
 0x593   :  { %v769_v8 = vpop.f32.mrb[15].mxu0 }
 0x5b8   :  { %v584_v10 = vpop.f32.mrb[16].mxu0 }
 0x5b9   :  { %v590_v15 = vpack.c.bf16 %v584_v10, %v584_v10  ;;  %v780_v11 = vpop.f32.mrb[17].mxu0 }
 0x5ba   :  { %v587_v12 = vpop.f32.mrb[18].mxu0 }
 0x5bb   :  { %592 = vrot.lane.b32.xlu0 %v590_v15, %s856_s12  ;;  %v781_v13 = vpop.f32.mrb[19].mxu0 }
 0x5fd   :  { %v365_v16 = vpop.permute.xlu1 %364 }
 0x5fe   :  { %v368_v21 = vsel %vm141_vm2, %v250_v18, %v365_v16 }
 0x62d   :  { %v593_v17 = vpop.permute.xlu0 %592 }
 0x62e   :  { %v596_v19 = vsel %vm141_vm2, %v479_v14, %v593_v17 }
 0x62f   :  { %v598_v20 = vrot.slane %v596_v19, 4 }
 0x631   :  { %v600_v22 = vsel %vm206_vm4, %v368_v21, %v598_v20 }
 0x632   :  { %787 = vmatmul.mubr.msk.bf16.vlgmr.msra.gmra.mrb[16].mxu1 %vm29_vm0, %v600_v22 }
 0x705   :  { %v660_v24 = vpop.f32.mrb[16].mxu1 }
 0x706   :  { %v661_v25 = vadd.f32 %v700_v23, %v660_v24  ;;  %v788_v26 = vpop.f32.mrb[17].mxu1 }
 0x707   :  { %v663_v27 = vpop.f32.mrb[18].mxu1 }
 0x708   :  { %v667_v28 = vadd.f32 %v661_v25, %v898_v0  ;;  %v664_v29 = vadd.f32 %v700_v23, %v663_v27  ;;  %v789_v30 = vpop.f32.mrb[19].mxu1 }
 0x70a   :  { %669 = vst.msk [vmem:[#allocation2] sm:$0xff] %vm29_vm0, %v667_v28  ;;  %v668_v31 = vadd.f32 %v664_v29, %v903_v1 }
 0x70c   :  { %670 = vst.msk [vmem:[#allocation2 + $0x8] sm:$0xff] %vm29_vm0, %v668_v31 }
 0x70d   :  { %836 = shalt.err (!%p833_p4)
}
 0x70e   :  { %s837_s20 = scalar_lea.hbm %s1030_s6, 256 }
 0x70f   :  { %p838_p5 = scmp.ne.s32.totalorder %s1030_s6, %s837_s20  ;;  %p841_p6 = scmp.lt.u32.totalorder %s837_s20, %s1030_s6 }
 0x711   :  { %p843_p7 = pnand %p841_p6, %p838_p5 }
 0x713   :  { %846 = shalt.err (!%p843_p7)
}
 0x714   :  { %s858_s0 = smov 128   ;;  %s859_s25 = smov 8  }
 0x715   :  { %682 = dma.vmem_to_hbm [thread:$0]  %s677_s17, 256, %s1030_s6, [#allocation3], %s858_s0, %s858_s0, %s859_s25  }
 0x716   :  { %847 = dma.done.wait [#allocation3], 256  }
 0x717   :  { %848 = vsyncadd [#allocation3], 4294967040 }
 0x718   :  { %686 = vsyncpa [#allocation3], 1 }

</bundles_post_ra>
